<compile_context>
chip_gen: v7x
topology: tpu7x:2x2x1
jax: 0.10.0
libtpu: 0.0.40
codegen_flags: <defaults>
</compile_context>

<pallas_src>
import functools

import jax
import jax.numpy as jnp
from jax import lax
from jax.experimental import pallas as pl
from jax.experimental.pallas import tpu as pltpu

# TODO(synk): multi-layer / bidirectional GRU variants and the embedding /
# BERT-embedding input branches of the module are not implemented; this kernel
# covers the single-layer unidirectional raw-feature config.
# TODO(synk): optional v5e micro-opt (split the per-step gh matmul into rz / n
# halves to start the EUP sigmoids earlier) is not applied; only worth it if a
# bundle dump shows the EUP tail, not the MXU, bounding the serial step.


def _round_up(v, m):
    return (v + m - 1) // m * m


def _pad_axis(a, axis, new_size):
    pad = [(0, 0)] * a.ndim
    pad[axis] = (0, new_size - a.shape[axis])
    return jnp.pad(a, pad)


def _pad_gates(w, Hp, axis):
    """w holds 3 gates (r|z|n) along `axis`; zero-pad each gate to Hp."""
    parts = jnp.split(w, 3, axis=axis)
    parts = [_pad_axis(p, axis, Hp) for p in parts]
    return jnp.concatenate(parts, axis=axis)


def gru_kernel(maxlen_ref, x_ref, len_ref, w_ih_ref, w_hh_ref, b_i_ref,
               b_hn_ref, w_fc_ref, b_fc_ref, hidden_ref, logit_ref,
               gi_scr, h_scr, acc_scr, *, chunk_len, total_length, unroll):
    """Grid = (batch_block, time_chunk). h/acc carry lives in scratch across
    the (arbitrary) chunk axis; outputs are written on the last chunk."""
    b = pl.program_id(0)
    c = pl.program_id(1)
    nc = pl.num_programs(1)
    Tc = chunk_len
    Bb, Hp = h_scr.shape
    Dp = x_ref.shape[-1]

    @pl.when(c == 0)
    def _init():
        h_scr[...] = jnp.zeros_like(h_scr)
        acc_scr[...] = jnp.zeros_like(acc_scr)

    blk_max_len = maxlen_ref[b]          # SMEM scalar: max length in this block
    chunk_start = c * Tc

    # Skip whole chunks that lie entirely past every sequence in the block:
    # past-length steps are pure waste (h frozen, outputs zero).
    @pl.when(chunk_start < blk_max_len)
    def _compute():
        # ---- Phase 1: hoisted input projection for this chunk (one MXU dot).
        # b_ih and the r/z parts of b_hh are pre-folded into b_i, so the
        # recurrent loop only needs b_hn.
        x_c = x_ref[...].reshape(Tc * Bb, Dp)
        gi = jnp.dot(x_c, w_ih_ref[...], preferred_element_type=jnp.float32)
        gi_scr[...] = (gi + b_i_ref[...]).reshape(Tc, Bb, 3 * Hp)

        lengths = len_ref[...]           # (Bb, 1) int32
        b_hn = b_hn_ref[...]             # (1, Hp) f32
        w_hh = w_hh_ref[...]             # (Hp, 3Hp) compute dtype

        # ---- Phase 2: sequential recurrence (only h @ W_hh per step). Gate
        # math stays f32 (portable to v5e which has no bf16 VPU/EUP).
        def step(i, carry):
            h_prev, acc = carry                      # (Bb, Hp) f32 each
            gi_t = gi_scr[i]                         # (Bb, 3Hp) f32
            gh = jnp.dot(h_prev.astype(w_hh.dtype), w_hh,
                         preferred_element_type=jnp.float32)
            r = jax.nn.sigmoid(gi_t[:, 0:Hp] + gh[:, 0:Hp])
            z = jax.nn.sigmoid(gi_t[:, Hp:2 * Hp] + gh[:, Hp:2 * Hp])
            n = jnp.tanh(gi_t[:, 2 * Hp:3 * Hp]
                         + r * (gh[:, 2 * Hp:3 * Hp] + b_hn))
            h_new = (1.0 - z) * n + z * h_prev
            # packed-sequence semantics: freeze state & zero outputs past len.
            valid = (chunk_start + i) < lengths      # (Bb, 1) bool
            acc = acc + jnp.where(valid, h_new, 0.0)
            h = jnp.where(valid, h_new, h_prev)
            return h, acc

        h_f, acc_f = lax.fori_loop(0, Tc, step, (h_scr[...], acc_scr[...]),
                                   unroll=unroll)
        h_scr[...] = h_f
        acc_scr[...] = acc_f

    # ---- Finalize: mean-pool over total_length, then out_fc (f32, tiny). ----
    @pl.when(c == nc - 1)
    def _finalize():
        hidden = acc_scr[...] * (1.0 / float(total_length))
        hidden_ref[...] = hidden
        logit_ref[...] = (jnp.dot(hidden, w_fc_ref[...],
                                  preferred_element_type=jnp.float32)
                          + b_fc_ref[...])


def gru_forward(x, lengths, params, *, total_length=None,
                compute_dtype=jnp.bfloat16, chunk_len=None,
                sort_by_length=True):
    """x: (B, T, D) float32 (batch_first, like the PyTorch module).
       lengths: (B,) int valid lengths (batch['x_length'])."""
    B, T, D = x.shape
    H = params["w_hh_t"].shape[0]
    C = params["w_fc_t"].shape[1]
    if total_length is None:
        total_length = T                 # module uses max(x_length) == T here

    lengths = lengths.astype(jnp.int32)

    # Lane-align the per-gate hidden width and the class width; pad D only
    # when it is large (padding tiny D inflates x memory for no matmul gain).
    Hp = _round_up(H, 128)
    Cp = _round_up(C, 128)
    Dp = D if D <= 128 else _round_up(D, 128)

    # ---- batch blocking: >=2 blocks when B > 8 (feeds both v7x TCs via the
    # "parallel" grid axis); 256-row blocks for very large B (v6e/v7x MXU). ---
    if B <= 8:
        Bb = _round_up(B, 8)
    elif B < 256:
        Bb = _round_up(pl.cdiv(B, 2), 8)
    elif B < 512:
        Bb = 128
    else:
        Bb = 256
    B_pad = _round_up(B, Bb)
    nb = B_pad // Bb

    # ---- time chunking: keep the f32 gi chunk around <= 8 MiB. --------------
    if chunk_len is None:
        budget_rows = max(1, (8 << 20) // max(1, Bb * 3 * Hp * 4))
        chunk_len = max(1, min(T, 32, budget_rows))
    Tc = chunk_len
    T_pad = _round_up(T, Tc)
    nc = T_pad // Tc
    unroll = True if Tc <= 8 else 4

    # ---- pad & repack parameters (zero padding keeps padded lanes at 0). ----
    w_ih = _pad_gates(_pad_axis(params["w_ih_t"], 0, Dp), Hp, 1)     # (Dp, 3Hp)
    w_hh = _pad_gates(_pad_axis(params["w_hh_t"], 0, Hp), Hp, 1)     # (Hp, 3Hp)
    b_ih = _pad_gates(params["b_ih"], Hp, axis=1)                    # (1, 3Hp)
    b_hh = _pad_gates(params["b_hh"], Hp, axis=1)                    # (1, 3Hp)
    # Fold b_hh_r, b_hh_z into the precomputed projection bias; keep b_hn.
    b_i = b_ih + jnp.concatenate(
        [b_hh[:, :Hp], b_hh[:, Hp:2 * Hp], jnp.zeros((1, Hp), b_hh.dtype)],
        axis=1)
    b_hn = b_hh[:, 2 * Hp:3 * Hp]                                    # (1, Hp)
    w_fc = _pad_axis(_pad_axis(params["w_fc_t"], 0, Hp), 1, Cp)      # (Hp, Cp)
    b_fc = _pad_axis(params["b_fc"], 1, Cp)                          # (1, Cp)

    # bf16 operands for the hot matmuls (f32 accumulation via
    # preferred_element_type); biases / carries / gate math stay f32.
    w_ih = w_ih.astype(compute_dtype)
    w_hh = w_hh.astype(compute_dtype)

    # ---- sort by length (descending) so blocks are length-homogeneous. ------
    if sort_by_length:
        order = jnp.argsort(-lengths)
        inv = jnp.argsort(order)
        x_in = x[order]
        len_in = lengths[order]
    else:
        x_in, len_in = x, lengths

    # ---- inputs: time-major padded x, per-row lengths, per-block max len. ---
    x_tm = jnp.transpose(x_in, (1, 0, 2))               # (T, B, D)
    x_tm = _pad_axis(x_tm, 0, T_pad)
    x_tm = _pad_axis(x_tm, 1, B_pad)
    x_tm = _pad_axis(x_tm, 2, Dp).astype(compute_dtype)  # (T_pad, B_pad, Dp)
    len2d = _pad_axis(len_in.reshape(B, 1), 0, B_pad)     # (B_pad, 1) int32
    maxlen = len2d[:, 0].reshape(nb, Bb).max(axis=1).astype(jnp.int32)  # (nb,)

    kernel = functools.partial(gru_kernel, chunk_len=Tc,
                               total_length=total_length, unroll=unroll)

    winv = pl.Buffered(1)   # loop-invariant operands: single-buffer (VMEM)

    grid_spec = pltpu.PrefetchScalarGridSpec(
        num_scalar_prefetch=1,                    # maxlen -> SMEM
        grid=(nb, nc),
        in_specs=[
            pl.BlockSpec((Tc, Bb, Dp), lambda b, c, ml: (c, b, 0)),     # x
            pl.BlockSpec((Bb, 1), lambda b, c, ml: (b, 0)),             # lengths
            pl.BlockSpec((Dp, 3 * Hp), lambda b, c, ml: (0, 0),
                         pipeline_mode=winv),                           # w_ih^T
            pl.BlockSpec((Hp, 3 * Hp), lambda b, c, ml: (0, 0),
                         pipeline_mode=winv),                           # w_hh^T
            pl.BlockSpec((1, 3 * Hp), lambda b, c, ml: (0, 0),
                         pipeline_mode=winv),                           # folded bias
            pl.BlockSpec((1, Hp), lambda b, c, ml: (0, 0),
                         pipeline_mode=winv),                           # b_hn
            pl.BlockSpec((Hp, Cp), lambda b, c, ml: (0, 0),
                         pipeline_mode=winv),                           # w_fc^T
            pl.BlockSpec((1, Cp), lambda b, c, ml: (0, 0),
                         pipeline_mode=winv),                           # b_fc
        ],
        out_specs=[
            pl.BlockSpec((Bb, Hp), lambda b, c, ml: (b, 0)),            # hidden
            pl.BlockSpec((Bb, Cp), lambda b, c, ml: (b, 0)),            # logit
        ],
        scratch_shapes=[
            pltpu.VMEM((Tc, Bb, 3 * Hp), jnp.float32),   # gi chunk
            pltpu.VMEM((Bb, Hp), jnp.float32),           # h carry
            pltpu.VMEM((Bb, Hp), jnp.float32),           # acc carry
        ],
    )

    # ---- explicit VMEM budget (with headroom) + advisory cost estimate. -----
    cds = jnp.dtype(compute_dtype).itemsize
    vmem_need = (2 * Tc * Bb * Dp * cds                   # x (double buffered)
                 + Tc * Bb * 3 * Hp * 4                   # gi scratch
                 + (Dp + Hp) * 3 * Hp * cds               # w_ih + w_hh (1-buf)
                 + Hp * Cp * 4                            # w_fc
                 + (3 * Hp + Hp + Cp) * 4 * 2             # biases
                 + 2 * Bb * Hp * 4                        # h/acc carries
                 + 2 * (Bb * Hp + Bb * Cp) * 4            # outputs
                 + 2 * Bb * 4)                            # lengths
    vmem_limit = int(min(max(vmem_need * 1.5 + (4 << 20), 32 << 20), 64 << 20))

    cost = pl.CostEstimate(
        flops=int(2 * B_pad * T_pad * Dp * 3 * Hp
                  + 2 * B_pad * T_pad * Hp * 3 * Hp
                  + 2 * B_pad * Hp * Cp),
        transcendentals=int(3 * B_pad * T_pad * Hp),
        bytes_accessed=int(T_pad * B_pad * Dp * cds
                           + (Dp + Hp) * 3 * Hp * cds + Hp * Cp * 4
                           + B_pad * (Hp + Cp) * 4),
    )

    hidden_p, logit_p = pl.pallas_call(
        kernel,
        grid_spec=grid_spec,
        out_shape=(jax.ShapeDtypeStruct((B_pad, Hp), jnp.float32),
                   jax.ShapeDtypeStruct((B_pad, Cp), jnp.float32)),
        compiler_params=pltpu.CompilerParams(
            dimension_semantics=("parallel", "arbitrary"),
            vmem_limit_bytes=vmem_limit),
        cost_estimate=cost,
    )(maxlen, x_tm, len2d, w_ih, w_hh, b_i, b_hn, w_fc, b_fc)

    hidden = hidden_p[:B, :H]
    logit = logit_p[:B, :C]
    if sort_by_length:
        hidden = hidden[inv]
        logit = logit[inv]
    return {"hidden": hidden, "logit": logit}


def gru_reference(x, lengths, params, *, compute_dtype=jnp.float32,
                  total_length=None):
    """Pure-JAX reference matching torch semantics (same matmul dtypes)."""
    B, T, D = x.shape
    H = params["w_hh_t"].shape[0]
    if total_length is None:
        total_length = T
    cdt = compute_dtype
    w_ih = params["w_ih_t"].astype(cdt)
    w_hh = params["w_hh_t"].astype(cdt)
    b_ih, b_hh = params["b_ih"], params["b_hh"]
    h = jnp.zeros((B, H), jnp.float32)
    outs = []
    for t in range(T):
        gi = jnp.dot(x[:, t].astype(cdt), w_ih,
                     preferred_element_type=jnp.float32) + b_ih
        gh = jnp.dot(h.astype(cdt), w_hh,
                     preferred_element_type=jnp.float32) + b_hh
        r = jax.nn.sigmoid(gi[:, :H] + gh[:, :H])
        z = jax.nn.sigmoid(gi[:, H:2 * H] + gh[:, H:2 * H])
        n = jnp.tanh(gi[:, 2 * H:] + r * gh[:, 2 * H:])
        h_new = (1.0 - z) * n + z * h
        valid = (t < lengths)[:, None]
        outs.append(jnp.where(valid, h_new, 0.0))
        h = jnp.where(valid, h_new, h)
    seq_o = jnp.stack(outs, axis=1)              # (B, T, H), zero-padded
    hidden = jnp.sum(seq_o, axis=1) / float(total_length)
    logit = hidden @ params["w_fc_t"] + params["b_fc"]
    return hidden, logit


def init_params(key, input_dim, hidden_dim, num_classes):
    """Deterministic init mirroring torch shapes: GRU uniform(-1/sqrt(H), 1/sqrt(H)),
    Linear uniform(-1/sqrt(fan_in), 1/sqrt(fan_in)). Weights stored transposed."""
    k = jnp.sqrt(1.0 / hidden_dim)
    kf = jnp.sqrt(1.0 / hidden_dim)
    keys = jax.random.split(key, 6)
    u = lambda kk, shape, bound: jax.random.uniform(
        kk, shape, jnp.float32, -bound, bound)
    return {
        "w_ih_t": u(keys[0], (input_dim, 3 * hidden_dim), k),
        "w_hh_t": u(keys[1], (hidden_dim, 3 * hidden_dim), k),
        "b_ih": u(keys[2], (1, 3 * hidden_dim), k),
        "b_hh": u(keys[3], (1, 3 * hidden_dim), k),
        "w_fc_t": u(keys[4], (hidden_dim, num_classes), kf),
        "b_fc": u(keys[5], (1, num_classes), kf),
    }


if __name__ == "__main__":
    B, T, D, H, C = 8, 8, 16, 32, 4

    key = jax.random.PRNGKey(0)
    kx, kp = jax.random.split(key)
    x = jax.random.normal(kx, (B, T, D), jnp.float32)
    lengths = jnp.array([8, 5, 3, 8, 6, 2, 7, 4], jnp.int32)   # max == T
    params = init_params(kp, D, H, C)

    # f32 path: tight numerical check against the pure-JAX reference.
    out32 = gru_forward(x, lengths, params, compute_dtype=jnp.float32)
    jax.block_until_ready(out32)
    ref_h32, ref_l32 = gru_reference(x, lengths, params,
                                     compute_dtype=jnp.float32)
    assert jnp.allclose(out32["hidden"], ref_h32, atol=1e-4, rtol=1e-4)
    assert jnp.allclose(out32["logit"], ref_l32, atol=1e-4, rtol=1e-4)

    # bf16 matmul path (default / production config): check against a bf16
    # reference with a tolerance that still catches gate/masking bugs.
    out_bf = gru_forward(x, lengths, params)
    jax.block_until_ready(out_bf)
    ref_hbf, ref_lbf = gru_reference(x, lengths, params,
                                     compute_dtype=jnp.bfloat16)
    assert jnp.allclose(out_bf["hidden"], ref_hbf, atol=1e-2, rtol=1e-2)
    assert jnp.allclose(out_bf["logit"], ref_lbf, atol=1e-2, rtol=1e-2)

    print("KERNEL_OK")
</pallas_src>

<mosaic_0001>
module attributes {stable_mosaic.version = 11 : i64} {
  func.func @gru_kernel(%arg0: i32, %arg1: i32, %arg2: memref<1xi32, #tpu.memory_space<smem>>, %arg3: memref<8x8x16xf32, #tpu.memory_space<vmem>>, %arg4: memref<8x1xi32, #tpu.memory_space<vmem>>, %arg5: memref<16x384xf32, #tpu.memory_space<vmem>>, %arg6: memref<128x384xf32, #tpu.memory_space<vmem>>, %arg7: memref<1x384xf32, #tpu.memory_space<vmem>>, %arg8: memref<1x128xf32, #tpu.memory_space<vmem>>, %arg9: memref<128x128xf32, #tpu.memory_space<vmem>>, %arg10: memref<1x128xf32, #tpu.memory_space<vmem>>, %arg11: memref<8x128xf32, #tpu.memory_space<vmem>>, %arg12: memref<8x128xf32, #tpu.memory_space<vmem>>, %arg13: memref<8x8x384xf32, #tpu.memory_space<vmem>>, %arg14: memref<8x128xf32, #tpu.memory_space<vmem>>, %arg15: memref<8x128xf32, #tpu.memory_space<vmem>>) attributes {dimension_semantics = [#tpu.dimension_semantics<parallel>, #tpu.dimension_semantics<arbitrary>], iteration_bounds = array<i64: 1, 1>, scalar_prefetch = 1 : i64, scratch_operands = 3 : i64, tpu.core_type = #tpu.core_type<tc>, window_params = [{transform_indices = @transform_0, window_bounds = array<i64: 8, 8, 16>}, {transform_indices = @transform_1, window_bounds = array<i64: 8, 1>}, {pipeline_mode = #tpu.pipeline_mode<synchronous>, transform_indices = @transform_2, window_bounds = array<i64: 16, 384>}, {pipeline_mode = #tpu.pipeline_mode<synchronous>, transform_indices = @transform_3, window_bounds = array<i64: 128, 384>}, {pipeline_mode = #tpu.pipeline_mode<synchronous>, transform_indices = @transform_4, window_bounds = array<i64: 1, 384>}, {pipeline_mode = #tpu.pipeline_mode<synchronous>, transform_indices = @transform_5, window_bounds = array<i64: 1, 128>}, {pipeline_mode = #tpu.pipeline_mode<synchronous>, transform_indices = @transform_6, window_bounds = array<i64: 128, 128>}, {pipeline_mode = #tpu.pipeline_mode<synchronous>, transform_indices = @transform_7, window_bounds = array<i64: 1, 128>}, {transform_indices = @transform_8, window_bounds = array<i64: 8, 128>}, {transform_indices = @transform_9, window_bounds = array<i64: 8, 128>}]} {
    %c0_i32 = arith.constant 0 : i32
    %0 = arith.cmpi eq, %arg1, %c0_i32 : i32
    %1 = arith.extui %0 : i1 to i32
    %c0_i32_0 = arith.constant 0 : i32
    %2 = arith.cmpi ne, %1, %c0_i32_0 : i32
    scf.if %2 {
      %cst = arith.constant 0.000000e+00 : f32
      %12 = vector.broadcast %cst : f32 to vector<8x128xf32>
      %c0 = arith.constant 0 : index
      %c0_4 = arith.constant 0 : index
      %13 = vector.load %arg14[%c0, %c0_4] : memref<8x128xf32, #tpu.memory_space<vmem>>, vector<8x128xf32>
      tpu.vector_store %arg14[%c0, %c0_4], %12 {strides = array<i32>} : memref<8x128xf32, #tpu.memory_space<vmem>>, vector<8x128xf32>,
      %cst_5 = arith.constant 0.000000e+00 : f32
      %14 = vector.broadcast %cst_5 : f32 to vector<8x128xf32>
      %c0_6 = arith.constant 0 : index
      %c0_7 = arith.constant 0 : index
      %15 = vector.load %arg15[%c0_6, %c0_7] : memref<8x128xf32, #tpu.memory_space<vmem>>, vector<8x128xf32>
      tpu.vector_store %arg15[%c0_6, %c0_7], %14 {strides = array<i32>} : memref<8x128xf32, #tpu.memory_space<vmem>>, vector<8x128xf32>,
    } else {
    }
    %3 = arith.index_cast %arg0 : i32 to index
    %4 = memref.load %arg2[%3] : memref<1xi32, #tpu.memory_space<smem>>
    %c8_i32 = arith.constant 8 : i32
    %5 = arith.muli %arg1, %c8_i32 : i32
    %6 = arith.cmpi slt, %5, %4 : i32
    %7 = arith.extui %6 : i1 to i32
    %c0_i32_1 = arith.constant 0 : i32
    %8 = arith.cmpi ne, %7, %c0_i32_1 : i32
    scf.if %8 {
      %c0 = arith.constant 0 : index
      %c0_4 = arith.constant 0 : index
      %c0_5 = arith.constant 0 : index
      %12 = vector.load %arg3[%c0, %c0_4, %c0_5] : memref<8x8x16xf32, #tpu.memory_space<vmem>>, vector<8x8x16xf32>
      %13 = vector.shape_cast %12 : vector<8x8x16xf32> to vector<64x16xf32>
      %c0_6 = arith.constant 0 : index
      %c0_7 = arith.constant 0 : index
      %14 = vector.load %arg5[%c0_6, %c0_7] : memref<16x384xf32, #tpu.memory_space<vmem>>, vector<16x384xf32>
      %cst = arith.constant dense<0.000000e+00> : vector<64x384xf32>
      %15 = tpu.matmul %13, %14, %cst {dimension_numbers = #tpu.dot_dimension_numbers<[1], [0], [0], [1], [0, 0, 1, 1], [], []>} : vector<64x16xf32>, vector<16x384xf32>, vector<64x384xf32> -> vector<64x384xf32>
      %c0_8 = arith.constant 0 : index
      %c0_9 = arith.constant 0 : index
      %16 = vector.load %arg7[%c0_8, %c0_9] : memref<1x384xf32, #tpu.memory_space<vmem>>, vector<1x384xf32>
      %17 = vector.broadcast %16 : vector<1x384xf32> to vector<64x384xf32>
      %18 = arith.addf %15, %17 : vector<64x384xf32>
      %19 = vector.shape_cast %18 : vector<64x384xf32> to vector<8x8x384xf32>
      %c0_10 = arith.constant 0 : index
      %c0_11 = arith.constant 0 : index
      %c0_12 = arith.constant 0 : index
      %20 = vector.load %arg13[%c0_10, %c0_11, %c0_12] : memref<8x8x384xf32, #tpu.memory_space<vmem>>, vector<8x8x384xf32>
      tpu.vector_store %arg13[%c0_10, %c0_11, %c0_12], %19 {strides = array<i32>} : memref<8x8x384xf32, #tpu.memory_space<vmem>>, vector<8x8x384xf32>,
      %c0_13 = arith.constant 0 : index
      %c0_14 = arith.constant 0 : index
      %21 = vector.load %arg4[%c0_13, %c0_14] : memref<8x1xi32, #tpu.memory_space<vmem>>, vector<8x1xi32>
      %c0_15 = arith.constant 0 : index
      %c0_16 = arith.constant 0 : index
      %22 = vector.load %arg8[%c0_15, %c0_16] : memref<1x128xf32, #tpu.memory_space<vmem>>, vector<1x128xf32>
      %c0_17 = arith.constant 0 : index
      %c0_18 = arith.constant 0 : index
      %23 = vector.load %arg6[%c0_17, %c0_18] : memref<128x384xf32, #tpu.memory_space<vmem>>, vector<128x384xf32>
      %c0_19 = arith.constant 0 : index
      %c0_20 = arith.constant 0 : index
      %24 = vector.load %arg14[%c0_19, %c0_20] : memref<8x128xf32, #tpu.memory_space<vmem>>, vector<8x128xf32>
      %c0_21 = arith.constant 0 : index
      %c0_22 = arith.constant 0 : index
      %25 = vector.load %arg15[%c0_21, %c0_22] : memref<8x128xf32, #tpu.memory_space<vmem>>, vector<8x128xf32>
      %c0_i32_23 = arith.constant 0 : i32
      %26 = arith.index_cast %c0_i32_23 : i32 to index
      %c0_24 = arith.constant 0 : index
      %c0_25 = arith.constant 0 : index
      %27 = vector.load %arg13[%26, %c0_24, %c0_25] : memref<8x8x384xf32, #tpu.memory_space<vmem>>, vector<1x8x384xf32>
      %28 = vector.shape_cast %27 : vector<1x8x384xf32> to vector<8x384xf32>
      %cst_26 = arith.constant dense<0.000000e+00> : vector<8x384xf32>
      %29 = tpu.matmul %24, %23, %cst_26 {dimension_numbers = #tpu.dot_dimension_numbers<[1], [0], [0], [1], [0, 0, 1, 1], [], []>} : vector<8x128xf32>, vector<128x384xf32>, vector<8x384xf32> -> vector<8x384xf32>
      %30 = vector.extract_strided_slice %28 {offsets = [0, 0], sizes = [8, 128], strides = [1, 1]} : vector<8x384xf32> to vector<8x128xf32>
      %31 = vector.extract_strided_slice %29 {offsets = [0, 0], sizes = [8, 128], strides = [1, 1]} : vector<8x384xf32> to vector<8x128xf32>
      %32 = arith.addf %30, %31 : vector<8x128xf32>
      %33 = arith.negf %32 : vector<8x128xf32>
      %34 = math.exp %33 : vector<8x128xf32>
      %cst_27 = arith.constant 1.000000e+00 : f32
      %35 = vector.broadcast %cst_27 : f32 to vector<8x128xf32>
      %36 = arith.addf %35, %34 : vector<8x128xf32>
      %37 = arith.divf %35, %36 : vector<8x128xf32>
      %38 = vector.extract_strided_slice %28 {offsets = [0, 128], sizes = [8, 128], strides = [1, 1]} : vector<8x384xf32> to vector<8x128xf32>
      %39 = vector.extract_strided_slice %29 {offsets = [0, 128], sizes = [8, 128], strides = [1, 1]} : vector<8x384xf32> to vector<8x128xf32>
      %40 = arith.addf %38, %39 : vector<8x128xf32>
      %41 = arith.negf %40 : vector<8x128xf32>
      %42 = math.exp %41 : vector<8x128xf32>
      %cst_28 = arith.constant 1.000000e+00 : f32
      %43 = vector.broadcast %cst_28 : f32 to vector<8x128xf32>
      %44 = arith.addf %43, %42 : vector<8x128xf32>
      %45 = arith.divf %43, %44 : vector<8x128xf32>
      %46 = vector.extract_strided_slice %28 {offsets = [0, 256], sizes = [8, 128], strides = [1, 1]} : vector<8x384xf32> to vector<8x128xf32>
      %47 = vector.extract_strided_slice %29 {offsets = [0, 256], sizes = [8, 128], strides = [1, 1]} : vector<8x384xf32> to vector<8x128xf32>
      %48 = vector.broadcast %22 : vector<1x128xf32> to vector<8x128xf32>
      %49 = arith.addf %47, %48 : vector<8x128xf32>
      %50 = arith.mulf %37, %49 : vector<8x128xf32>
      %51 = arith.addf %46, %50 : vector<8x128xf32>
      %52 = math.tanh %51 : vector<8x128xf32>
      %cst_29 = arith.constant 1.000000e+00 : f32
      %53 = vector.broadcast %cst_29 : f32 to vector<8x128xf32>
      %54 = arith.subf %53, %45 : vector<8x128xf32>
      %55 = arith.mulf %54, %52 : vector<8x128xf32>
      %56 = arith.mulf %45, %24 : vector<8x128xf32>
      %57 = arith.addf %55, %56 : vector<8x128xf32>
      %58 = arith.addi %5, %c0_i32_23 : i32
      %59 = vector.broadcast %58 : i32 to vector<8x1xi32>
      %60 = arith.cmpi slt, %59, %21 : vector<8x1xi32>
      %cst_30 = arith.constant 0.000000e+00 : f32
      %61 = vector.shape_cast %60 : vector<8x1xi1> to vector<8x1xi1>
      %62 = vector.broadcast %61 : vector<8x1xi1> to vector<8x128xi1>
      %63 = vector.broadcast %cst_30 : f32 to vector<8x128xf32>
      %64 = arith.select %62, %57, %63 : vector<8x128xi1>, vector<8x128xf32>
      %65 = arith.addf %25, %64 : vector<8x128xf32>
      %66 = vector.shape_cast %60 : vector<8x1xi1> to vector<8x1xi1>
      %67 = vector.broadcast %66 : vector<8x1xi1> to vector<8x128xi1>
      %68 = arith.select %67, %57, %24 : vector<8x128xi1>, vector<8x128xf32>
      %c1_i32 = arith.constant 1 : i32
      %69 = arith.index_cast %c1_i32 : i32 to index
      %c0_31 = arith.constant 0 : index
      %c0_32 = arith.constant 0 : index
      %70 = vector.load %arg13[%69, %c0_31, %c0_32] : memref<8x8x384xf32, #tpu.memory_space<vmem>>, vector<1x8x384xf32>
      %71 = vector.shape_cast %70 : vector<1x8x384xf32> to vector<8x384xf32>
      %cst_33 = arith.constant dense<0.000000e+00> : vector<8x384xf32>
      %72 = tpu.matmul %68, %23, %cst_33 {dimension_numbers = #tpu.dot_dimension_numbers<[1], [0], [0], [1], [0, 0, 1, 1], [], []>} : vector<8x128xf32>, vector<128x384xf32>, vector<8x384xf32> -> vector<8x384xf32>
      %73 = vector.extract_strided_slice %71 {offsets = [0, 0], sizes = [8, 128], strides = [1, 1]} : vector<8x384xf32> to vector<8x128xf32>
      %74 = vector.extract_strided_slice %72 {offsets = [0, 0], sizes = [8, 128], strides = [1, 1]} : vector<8x384xf32> to vector<8x128xf32>
      %75 = arith.addf %73, %74 : vector<8x128xf32>
      %76 = arith.negf %75 : vector<8x128xf32>
      %77 = math.exp %76 : vector<8x128xf32>
      %cst_34 = arith.constant 1.000000e+00 : f32
      %78 = vector.broadcast %cst_34 : f32 to vector<8x128xf32>
      %79 = arith.addf %78, %77 : vector<8x128xf32>
      %80 = arith.divf %78, %79 : vector<8x128xf32>
      %81 = vector.extract_strided_slice %71 {offsets = [0, 128], sizes = [8, 128], strides = [1, 1]} : vector<8x384xf32> to vector<8x128xf32>
      %82 = vector.extract_strided_slice %72 {offsets = [0, 128], sizes = [8, 128], strides = [1, 1]} : vector<8x384xf32> to vector<8x128xf32>
      %83 = arith.addf %81, %82 : vector<8x128xf32>
      %84 = arith.negf %83 : vector<8x128xf32>
      %85 = math.exp %84 : vector<8x128xf32>
      %cst_35 = arith.constant 1.000000e+00 : f32
      %86 = vector.broadcast %cst_35 : f32 to vector<8x128xf32>
      %87 = arith.addf %86, %85 : vector<8x128xf32>
      %88 = arith.divf %86, %87 : vector<8x128xf32>
      %89 = vector.extract_strided_slice %71 {offsets = [0, 256], sizes = [8, 128], strides = [1, 1]} : vector<8x384xf32> to vector<8x128xf32>
      %90 = vector.extract_strided_slice %72 {offsets = [0, 256], sizes = [8, 128], strides = [1, 1]} : vector<8x384xf32> to vector<8x128xf32>
      %91 = vector.broadcast %22 : vector<1x128xf32> to vector<8x128xf32>
      %92 = arith.addf %90, %91 : vector<8x128xf32>
      %93 = arith.mulf %80, %92 : vector<8x128xf32>
      %94 = arith.addf %89, %93 : vector<8x128xf32>
      %95 = math.tanh %94 : vector<8x128xf32>
      %cst_36 = arith.constant 1.000000e+00 : f32
      %96 = vector.broadcast %cst_36 : f32 to vector<8x128xf32>
      %97 = arith.subf %96, %88 : vector<8x128xf32>
      %98 = arith.mulf %97, %95 : vector<8x128xf32>
      %99 = arith.mulf %88, %68 : vector<8x128xf32>
      %100 = arith.addf %98, %99 : vector<8x128xf32>
      %101 = arith.addi %5, %c1_i32 : i32
      %102 = vector.broadcast %101 : i32 to vector<8x1xi32>
      %103 = arith.cmpi slt, %102, %21 : vector<8x1xi32>
      %cst_37 = arith.constant 0.000000e+00 : f32
      %104 = vector.shape_cast %103 : vector<8x1xi1> to vector<8x1xi1>
      %105 = vector.broadcast %104 : vector<8x1xi1> to vector<8x128xi1>
      %106 = vector.broadcast %cst_37 : f32 to vector<8x128xf32>
      %107 = arith.select %105, %100, %106 : vector<8x128xi1>, vector<8x128xf32>
      %108 = arith.addf %65, %107 : vector<8x128xf32>
      %109 = vector.shape_cast %103 : vector<8x1xi1> to vector<8x1xi1>
      %110 = vector.broadcast %109 : vector<8x1xi1> to vector<8x128xi1>
      %111 = arith.select %110, %100, %68 : vector<8x128xi1>, vector<8x128xf32>
      %c2_i32 = arith.constant 2 : i32
      %112 = arith.index_cast %c2_i32 : i32 to index
      %c0_38 = arith.constant 0 : index
      %c0_39 = arith.constant 0 : index
      %113 = vector.load %arg13[%112, %c0_38, %c0_39] : memref<8x8x384xf32, #tpu.memory_space<vmem>>, vector<1x8x384xf32>
      %114 = vector.shape_cast %113 : vector<1x8x384xf32> to vector<8x384xf32>
      %cst_40 = arith.constant dense<0.000000e+00> : vector<8x384xf32>
      %115 = tpu.matmul %111, %23, %cst_40 {dimension_numbers = #tpu.dot_dimension_numbers<[1], [0], [0], [1], [0, 0, 1, 1], [], []>} : vector<8x128xf32>, vector<128x384xf32>, vector<8x384xf32> -> vector<8x384xf32>
      %116 = vector.extract_strided_slice %114 {offsets = [0, 0], sizes = [8, 128], strides = [1, 1]} : vector<8x384xf32> to vector<8x128xf32>
      %117 = vector.extract_strided_slice %115 {offsets = [0, 0], sizes = [8, 128], strides = [1, 1]} : vector<8x384xf32> to vector<8x128xf32>
      %118 = arith.addf %116, %117 : vector<8x128xf32>
      %119 = arith.negf %118 : vector<8x128xf32>
      %120 = math.exp %119 : vector<8x128xf32>
      %cst_41 = arith.constant 1.000000e+00 : f32
      %121 = vector.broadcast %cst_41 : f32 to vector<8x128xf32>
      %122 = arith.addf %121, %120 : vector<8x128xf32>
      %123 = arith.divf %121, %122 : vector<8x128xf32>
      %124 = vector.extract_strided_slice %114 {offsets = [0, 128], sizes = [8, 128], strides = [1, 1]} : vector<8x384xf32> to vector<8x128xf32>
      %125 = vector.extract_strided_slice %115 {offsets = [0, 128], sizes = [8, 128], strides = [1, 1]} : vector<8x384xf32> to vector<8x128xf32>
      %126 = arith.addf %124, %125 : vector<8x128xf32>
      %127 = arith.negf %126 : vector<8x128xf32>
      %128 = math.exp %127 : vector<8x128xf32>
      %cst_42 = arith.constant 1.000000e+00 : f32
      %129 = vector.broadcast %cst_42 : f32 to vector<8x128xf32>
      %130 = arith.addf %129, %128 : vector<8x128xf32>
      %131 = arith.divf %129, %130 : vector<8x128xf32>
      %132 = vector.extract_strided_slice %114 {offsets = [0, 256], sizes = [8, 128], strides = [1, 1]} : vector<8x384xf32> to vector<8x128xf32>
      %133 = vector.extract_strided_slice %115 {offsets = [0, 256], sizes = [8, 128], strides = [1, 1]} : vector<8x384xf32> to vector<8x128xf32>
      %134 = vector.broadcast %22 : vector<1x128xf32> to vector<8x128xf32>
      %135 = arith.addf %133, %134 : vector<8x128xf32>
      %136 = arith.mulf %123, %135 : vector<8x128xf32>
      %137 = arith.addf %132, %136 : vector<8x128xf32>
      %138 = math.tanh %137 : vector<8x128xf32>
      %cst_43 = arith.constant 1.000000e+00 : f32
      %139 = vector.broadcast %cst_43 : f32 to vector<8x128xf32>
      %140 = arith.subf %139, %131 : vector<8x128xf32>
      %141 = arith.mulf %140, %138 : vector<8x128xf32>
      %142 = arith.mulf %131, %111 : vector<8x128xf32>
      %143 = arith.addf %141, %142 : vector<8x128xf32>
      %144 = arith.addi %5, %c2_i32 : i32
      %145 = vector.broadcast %144 : i32 to vector<8x1xi32>
      %146 = arith.cmpi slt, %145, %21 : vector<8x1xi32>
      %cst_44 = arith.constant 0.000000e+00 : f32
      %147 = vector.shape_cast %146 : vector<8x1xi1> to vector<8x1xi1>
      %148 = vector.broadcast %147 : vector<8x1xi1> to vector<8x128xi1>
      %149 = vector.broadcast %cst_44 : f32 to vector<8x128xf32>
      %150 = arith.select %148, %143, %149 : vector<8x128xi1>, vector<8x128xf32>
      %151 = arith.addf %108, %150 : vector<8x128xf32>
      %152 = vector.shape_cast %146 : vector<8x1xi1> to vector<8x1xi1>
      %153 = vector.broadcast %152 : vector<8x1xi1> to vector<8x128xi1>
      %154 = arith.select %153, %143, %111 : vector<8x128xi1>, vector<8x128xf32>
      %c3_i32 = arith.constant 3 : i32
      %155 = arith.index_cast %c3_i32 : i32 to index
      %c0_45 = arith.constant 0 : index
      %c0_46 = arith.constant 0 : index
      %156 = vector.load %arg13[%155, %c0_45, %c0_46] : memref<8x8x384xf32, #tpu.memory_space<vmem>>, vector<1x8x384xf32>
      %157 = vector.shape_cast %156 : vector<1x8x384xf32> to vector<8x384xf32>
      %cst_47 = arith.constant dense<0.000000e+00> : vector<8x384xf32>
      %158 = tpu.matmul %154, %23, %cst_47 {dimension_numbers = #tpu.dot_dimension_numbers<[1], [0], [0], [1], [0, 0, 1, 1], [], []>} : vector<8x128xf32>, vector<128x384xf32>, vector<8x384xf32> -> vector<8x384xf32>
      %159 = vector.extract_strided_slice %157 {offsets = [0, 0], sizes = [8, 128], strides = [1, 1]} : vector<8x384xf32> to vector<8x128xf32>
      %160 = vector.extract_strided_slice %158 {offsets = [0, 0], sizes = [8, 128], strides = [1, 1]} : vector<8x384xf32> to vector<8x128xf32>
      %161 = arith.addf %159, %160 : vector<8x128xf32>
      %162 = arith.negf %161 : vector<8x128xf32>
      %163 = math.exp %162 : vector<8x128xf32>
      %cst_48 = arith.constant 1.000000e+00 : f32
      %164 = vector.broadcast %cst_48 : f32 to vector<8x128xf32>
      %165 = arith.addf %164, %163 : vector<8x128xf32>
      %166 = arith.divf %164, %165 : vector<8x128xf32>
      %167 = vector.extract_strided_slice %157 {offsets = [0, 128], sizes = [8, 128], strides = [1, 1]} : vector<8x384xf32> to vector<8x128xf32>
      %168 = vector.extract_strided_slice %158 {offsets = [0, 128], sizes = [8, 128], strides = [1, 1]} : vector<8x384xf32> to vector<8x128xf32>
      %169 = arith.addf %167, %168 : vector<8x128xf32>
      %170 = arith.negf %169 : vector<8x128xf32>
      %171 = math.exp %170 : vector<8x128xf32>
      %cst_49 = arith.constant 1.000000e+00 : f32
      %172 = vector.broadcast %cst_49 : f32 to vector<8x128xf32>
      %173 = arith.addf %172, %171 : vector<8x128xf32>
      %174 = arith.divf %172, %173 : vector<8x128xf32>
      %175 = vector.extract_strided_slice %157 {offsets = [0, 256], sizes = [8, 128], strides = [1, 1]} : vector<8x384xf32> to vector<8x128xf32>
      %176 = vector.extract_strided_slice %158 {offsets = [0, 256], sizes = [8, 128], strides = [1, 1]} : vector<8x384xf32> to vector<8x128xf32>
      %177 = vector.broadcast %22 : vector<1x128xf32> to vector<8x128xf32>
      %178 = arith.addf %176, %177 : vector<8x128xf32>
      %179 = arith.mulf %166, %178 : vector<8x128xf32>
      %180 = arith.addf %175, %179 : vector<8x128xf32>
      %181 = math.tanh %180 : vector<8x128xf32>
      %cst_50 = arith.constant 1.000000e+00 : f32
      %182 = vector.broadcast %cst_50 : f32 to vector<8x128xf32>
      %183 = arith.subf %182, %174 : vector<8x128xf32>
      %184 = arith.mulf %183, %181 : vector<8x128xf32>
      %185 = arith.mulf %174, %154 : vector<8x128xf32>
      %186 = arith.addf %184, %185 : vector<8x128xf32>
      %187 = arith.addi %5, %c3_i32 : i32
      %188 = vector.broadcast %187 : i32 to vector<8x1xi32>
      %189 = arith.cmpi slt, %188, %21 : vector<8x1xi32>
      %cst_51 = arith.constant 0.000000e+00 : f32
      %190 = vector.shape_cast %189 : vector<8x1xi1> to vector<8x1xi1>
      %191 = vector.broadcast %190 : vector<8x1xi1> to vector<8x128xi1>
      %192 = vector.broadcast %cst_51 : f32 to vector<8x128xf32>
      %193 = arith.select %191, %186, %192 : vector<8x128xi1>, vector<8x128xf32>
      %194 = arith.addf %151, %193 : vector<8x128xf32>
      %195 = vector.shape_cast %189 : vector<8x1xi1> to vector<8x1xi1>
      %196 = vector.broadcast %195 : vector<8x1xi1> to vector<8x128xi1>
      %197 = arith.select %196, %186, %154 : vector<8x128xi1>, vector<8x128xf32>
      %c4_i32 = arith.constant 4 : i32
      %198 = arith.index_cast %c4_i32 : i32 to index
      %c0_52 = arith.constant 0 : index
      %c0_53 = arith.constant 0 : index
      %199 = vector.load %arg13[%198, %c0_52, %c0_53] : memref<8x8x384xf32, #tpu.memory_space<vmem>>, vector<1x8x384xf32>
      %200 = vector.shape_cast %199 : vector<1x8x384xf32> to vector<8x384xf32>
      %cst_54 = arith.constant dense<0.000000e+00> : vector<8x384xf32>
      %201 = tpu.matmul %197, %23, %cst_54 {dimension_numbers = #tpu.dot_dimension_numbers<[1], [0], [0], [1], [0, 0, 1, 1], [], []>} : vector<8x128xf32>, vector<128x384xf32>, vector<8x384xf32> -> vector<8x384xf32>
      %202 = vector.extract_strided_slice %200 {offsets = [0, 0], sizes = [8, 128], strides = [1, 1]} : vector<8x384xf32> to vector<8x128xf32>
      %203 = vector.extract_strided_slice %201 {offsets = [0, 0], sizes = [8, 128], strides = [1, 1]} : vector<8x384xf32> to vector<8x128xf32>
      %204 = arith.addf %202, %203 : vector<8x128xf32>
      %205 = arith.negf %204 : vector<8x128xf32>
      %206 = math.exp %205 : vector<8x128xf32>
      %cst_55 = arith.constant 1.000000e+00 : f32
      %207 = vector.broadcast %cst_55 : f32 to vector<8x128xf32>
      %208 = arith.addf %207, %206 : vector<8x128xf32>
      %209 = arith.divf %207, %208 : vector<8x128xf32>
      %210 = vector.extract_strided_slice %200 {offsets = [0, 128], sizes = [8, 128], strides = [1, 1]} : vector<8x384xf32> to vector<8x128xf32>
      %211 = vector.extract_strided_slice %201 {offsets = [0, 128], sizes = [8, 128], strides = [1, 1]} : vector<8x384xf32> to vector<8x128xf32>
      %212 = arith.addf %210, %211 : vector<8x128xf32>
      %213 = arith.negf %212 : vector<8x128xf32>
      %214 = math.exp %213 : vector<8x128xf32>
      %cst_56 = arith.constant 1.000000e+00 : f32
      %215 = vector.broadcast %cst_56 : f32 to vector<8x128xf32>
      %216 = arith.addf %215, %214 : vector<8x128xf32>
      %217 = arith.divf %215, %216 : vector<8x128xf32>
      %218 = vector.extract_strided_slice %200 {offsets = [0, 256], sizes = [8, 128], strides = [1, 1]} : vector<8x384xf32> to vector<8x128xf32>
      %219 = vector.extract_strided_slice %201 {offsets = [0, 256], sizes = [8, 128], strides = [1, 1]} : vector<8x384xf32> to vector<8x128xf32>
      %220 = vector.broadcast %22 : vector<1x128xf32> to vector<8x128xf32>
      %221 = arith.addf %219, %220 : vector<8x128xf32>
      %222 = arith.mulf %209, %221 : vector<8x128xf32>
      %223 = arith.addf %218, %222 : vector<8x128xf32>
      %224 = math.tanh %223 : vector<8x128xf32>
      %cst_57 = arith.constant 1.000000e+00 : f32
      %225 = vector.broadcast %cst_57 : f32 to vector<8x128xf32>
      %226 = arith.subf %225, %217 : vector<8x128xf32>
      %227 = arith.mulf %226, %224 : vector<8x128xf32>
      %228 = arith.mulf %217, %197 : vector<8x128xf32>
      %229 = arith.addf %227, %228 : vector<8x128xf32>
      %230 = arith.addi %5, %c4_i32 : i32
      %231 = vector.broadcast %230 : i32 to vector<8x1xi32>
      %232 = arith.cmpi slt, %231, %21 : vector<8x1xi32>
      %cst_58 = arith.constant 0.000000e+00 : f32
      %233 = vector.shape_cast %232 : vector<8x1xi1> to vector<8x1xi1>
      %234 = vector.broadcast %233 : vector<8x1xi1> to vector<8x128xi1>
      %235 = vector.broadcast %cst_58 : f32 to vector<8x128xf32>
      %236 = arith.select %234, %229, %235 : vector<8x128xi1>, vector<8x128xf32>
      %237 = arith.addf %194, %236 : vector<8x128xf32>
      %238 = vector.shape_cast %232 : vector<8x1xi1> to vector<8x1xi1>
      %239 = vector.broadcast %238 : vector<8x1xi1> to vector<8x128xi1>
      %240 = arith.select %239, %229, %197 : vector<8x128xi1>, vector<8x128xf32>
      %c5_i32 = arith.constant 5 : i32
      %241 = arith.index_cast %c5_i32 : i32 to index
      %c0_59 = arith.constant 0 : index
      %c0_60 = arith.constant 0 : index
      %242 = vector.load %arg13[%241, %c0_59, %c0_60] : memref<8x8x384xf32, #tpu.memory_space<vmem>>, vector<1x8x384xf32>
      %243 = vector.shape_cast %242 : vector<1x8x384xf32> to vector<8x384xf32>
      %cst_61 = arith.constant dense<0.000000e+00> : vector<8x384xf32>
      %244 = tpu.matmul %240, %23, %cst_61 {dimension_numbers = #tpu.dot_dimension_numbers<[1], [0], [0], [1], [0, 0, 1, 1], [], []>} : vector<8x128xf32>, vector<128x384xf32>, vector<8x384xf32> -> vector<8x384xf32>
      %245 = vector.extract_strided_slice %243 {offsets = [0, 0], sizes = [8, 128], strides = [1, 1]} : vector<8x384xf32> to vector<8x128xf32>
      %246 = vector.extract_strided_slice %244 {offsets = [0, 0], sizes = [8, 128], strides = [1, 1]} : vector<8x384xf32> to vector<8x128xf32>
      %247 = arith.addf %245, %246 : vector<8x128xf32>
      %248 = arith.negf %247 : vector<8x128xf32>
      %249 = math.exp %248 : vector<8x128xf32>
      %cst_62 = arith.constant 1.000000e+00 : f32
      %250 = vector.broadcast %cst_62 : f32 to vector<8x128xf32>
      %251 = arith.addf %250, %249 : vector<8x128xf32>
      %252 = arith.divf %250, %251 : vector<8x128xf32>
      %253 = vector.extract_strided_slice %243 {offsets = [0, 128], sizes = [8, 128], strides = [1, 1]} : vector<8x384xf32> to vector<8x128xf32>
      %254 = vector.extract_strided_slice %244 {offsets = [0, 128], sizes = [8, 128], strides = [1, 1]} : vector<8x384xf32> to vector<8x128xf32>
      %255 = arith.addf %253, %254 : vector<8x128xf32>
      %256 = arith.negf %255 : vector<8x128xf32>
      %257 = math.exp %256 : vector<8x128xf32>
      %cst_63 = arith.constant 1.000000e+00 : f32
      %258 = vector.broadcast %cst_63 : f32 to vector<8x128xf32>
      %259 = arith.addf %258, %257 : vector<8x128xf32>
      %260 = arith.divf %258, %259 : vector<8x128xf32>
      %261 = vector.extract_strided_slice %243 {offsets = [0, 256], sizes = [8, 128], strides = [1, 1]} : vector<8x384xf32> to vector<8x128xf32>
      %262 = vector.extract_strided_slice %244 {offsets = [0, 256], sizes = [8, 128], strides = [1, 1]} : vector<8x384xf32> to vector<8x128xf32>
      %263 = vector.broadcast %22 : vector<1x128xf32> to vector<8x128xf32>
      %264 = arith.addf %262, %263 : vector<8x128xf32>
      %265 = arith.mulf %252, %264 : vector<8x128xf32>
      %266 = arith.addf %261, %265 : vector<8x128xf32>
      %267 = math.tanh %266 : vector<8x128xf32>
      %cst_64 = arith.constant 1.000000e+00 : f32
      %268 = vector.broadcast %cst_64 : f32 to vector<8x128xf32>
      %269 = arith.subf %268, %260 : vector<8x128xf32>
      %270 = arith.mulf %269, %267 : vector<8x128xf32>
      %271 = arith.mulf %260, %240 : vector<8x128xf32>
      %272 = arith.addf %270, %271 : vector<8x128xf32>
      %273 = arith.addi %5, %c5_i32 : i32
      %274 = vector.broadcast %273 : i32 to vector<8x1xi32>
      %275 = arith.cmpi slt, %274, %21 : vector<8x1xi32>
      %cst_65 = arith.constant 0.000000e+00 : f32
      %276 = vector.shape_cast %275 : vector<8x1xi1> to vector<8x1xi1>
      %277 = vector.broadcast %276 : vector<8x1xi1> to vector<8x128xi1>
      %278 = vector.broadcast %cst_65 : f32 to vector<8x128xf32>
      %279 = arith.select %277, %272, %278 : vector<8x128xi1>, vector<8x128xf32>
      %280 = arith.addf %237, %279 : vector<8x128xf32>
      %281 = vector.shape_cast %275 : vector<8x1xi1> to vector<8x1xi1>
      %282 = vector.broadcast %281 : vector<8x1xi1> to vector<8x128xi1>
      %283 = arith.select %282, %272, %240 : vector<8x128xi1>, vector<8x128xf32>
      %c6_i32 = arith.constant 6 : i32
      %284 = arith.index_cast %c6_i32 : i32 to index
      %c0_66 = arith.constant 0 : index
      %c0_67 = arith.constant 0 : index
      %285 = vector.load %arg13[%284, %c0_66, %c0_67] : memref<8x8x384xf32, #tpu.memory_space<vmem>>, vector<1x8x384xf32>
      %286 = vector.shape_cast %285 : vector<1x8x384xf32> to vector<8x384xf32>
      %cst_68 = arith.constant dense<0.000000e+00> : vector<8x384xf32>
      %287 = tpu.matmul %283, %23, %cst_68 {dimension_numbers = #tpu.dot_dimension_numbers<[1], [0], [0], [1], [0, 0, 1, 1], [], []>} : vector<8x128xf32>, vector<128x384xf32>, vector<8x384xf32> -> vector<8x384xf32>
      %288 = vector.extract_strided_slice %286 {offsets = [0, 0], sizes = [8, 128], strides = [1, 1]} : vector<8x384xf32> to vector<8x128xf32>
      %289 = vector.extract_strided_slice %287 {offsets = [0, 0], sizes = [8, 128], strides = [1, 1]} : vector<8x384xf32> to vector<8x128xf32>
      %290 = arith.addf %288, %289 : vector<8x128xf32>
      %291 = arith.negf %290 : vector<8x128xf32>
      %292 = math.exp %291 : vector<8x128xf32>
      %cst_69 = arith.constant 1.000000e+00 : f32
      %293 = vector.broadcast %cst_69 : f32 to vector<8x128xf32>
      %294 = arith.addf %293, %292 : vector<8x128xf32>
      %295 = arith.divf %293, %294 : vector<8x128xf32>
      %296 = vector.extract_strided_slice %286 {offsets = [0, 128], sizes = [8, 128], strides = [1, 1]} : vector<8x384xf32> to vector<8x128xf32>
      %297 = vector.extract_strided_slice %287 {offsets = [0, 128], sizes = [8, 128], strides = [1, 1]} : vector<8x384xf32> to vector<8x128xf32>
      %298 = arith.addf %296, %297 : vector<8x128xf32>
      %299 = arith.negf %298 : vector<8x128xf32>
      %300 = math.exp %299 : vector<8x128xf32>
      %cst_70 = arith.constant 1.000000e+00 : f32
      %301 = vector.broadcast %cst_70 : f32 to vector<8x128xf32>
      %302 = arith.addf %301, %300 : vector<8x128xf32>
      %303 = arith.divf %301, %302 : vector<8x128xf32>
      %304 = vector.extract_strided_slice %286 {offsets = [0, 256], sizes = [8, 128], strides = [1, 1]} : vector<8x384xf32> to vector<8x128xf32>
      %305 = vector.extract_strided_slice %287 {offsets = [0, 256], sizes = [8, 128], strides = [1, 1]} : vector<8x384xf32> to vector<8x128xf32>
      %306 = vector.broadcast %22 : vector<1x128xf32> to vector<8x128xf32>
      %307 = arith.addf %305, %306 : vector<8x128xf32>
      %308 = arith.mulf %295, %307 : vector<8x128xf32>
      %309 = arith.addf %304, %308 : vector<8x128xf32>
      %310 = math.tanh %309 : vector<8x128xf32>
      %cst_71 = arith.constant 1.000000e+00 : f32
      %311 = vector.broadcast %cst_71 : f32 to vector<8x128xf32>
      %312 = arith.subf %311, %303 : vector<8x128xf32>
      %313 = arith.mulf %312, %310 : vector<8x128xf32>
      %314 = arith.mulf %303, %283 : vector<8x128xf32>
      %315 = arith.addf %313, %314 : vector<8x128xf32>
      %316 = arith.addi %5, %c6_i32 : i32
      %317 = vector.broadcast %316 : i32 to vector<8x1xi32>
      %318 = arith.cmpi slt, %317, %21 : vector<8x1xi32>
      %cst_72 = arith.constant 0.000000e+00 : f32
      %319 = vector.shape_cast %318 : vector<8x1xi1> to vector<8x1xi1>
      %320 = vector.broadcast %319 : vector<8x1xi1> to vector<8x128xi1>
      %321 = vector.broadcast %cst_72 : f32 to vector<8x128xf32>
      %322 = arith.select %320, %315, %321 : vector<8x128xi1>, vector<8x128xf32>
      %323 = arith.addf %280, %322 : vector<8x128xf32>
      %324 = vector.shape_cast %318 : vector<8x1xi1> to vector<8x1xi1>
      %325 = vector.broadcast %324 : vector<8x1xi1> to vector<8x128xi1>
      %326 = arith.select %325, %315, %283 : vector<8x128xi1>, vector<8x128xf32>
      %c7_i32 = arith.constant 7 : i32
      %327 = arith.index_cast %c7_i32 : i32 to index
      %c0_73 = arith.constant 0 : index
      %c0_74 = arith.constant 0 : index
      %328 = vector.load %arg13[%327, %c0_73, %c0_74] : memref<8x8x384xf32, #tpu.memory_space<vmem>>, vector<1x8x384xf32>
      %329 = vector.shape_cast %328 : vector<1x8x384xf32> to vector<8x384xf32>
      %cst_75 = arith.constant dense<0.000000e+00> : vector<8x384xf32>
      %330 = tpu.matmul %326, %23, %cst_75 {dimension_numbers = #tpu.dot_dimension_numbers<[1], [0], [0], [1], [0, 0, 1, 1], [], []>} : vector<8x128xf32>, vector<128x384xf32>, vector<8x384xf32> -> vector<8x384xf32>
      %331 = vector.extract_strided_slice %329 {offsets = [0, 0], sizes = [8, 128], strides = [1, 1]} : vector<8x384xf32> to vector<8x128xf32>
      %332 = vector.extract_strided_slice %330 {offsets = [0, 0], sizes = [8, 128], strides = [1, 1]} : vector<8x384xf32> to vector<8x128xf32>
      %333 = arith.addf %331, %332 : vector<8x128xf32>
      %334 = arith.negf %333 : vector<8x128xf32>
      %335 = math.exp %334 : vector<8x128xf32>
      %cst_76 = arith.constant 1.000000e+00 : f32
      %336 = vector.broadcast %cst_76 : f32 to vector<8x128xf32>
      %337 = arith.addf %336, %335 : vector<8x128xf32>
      %338 = arith.divf %336, %337 : vector<8x128xf32>
      %339 = vector.extract_strided_slice %329 {offsets = [0, 128], sizes = [8, 128], strides = [1, 1]} : vector<8x384xf32> to vector<8x128xf32>
      %340 = vector.extract_strided_slice %330 {offsets = [0, 128], sizes = [8, 128], strides = [1, 1]} : vector<8x384xf32> to vector<8x128xf32>
      %341 = arith.addf %339, %340 : vector<8x128xf32>
      %342 = arith.negf %341 : vector<8x128xf32>
      %343 = math.exp %342 : vector<8x128xf32>
      %cst_77 = arith.constant 1.000000e+00 : f32
      %344 = vector.broadcast %cst_77 : f32 to vector<8x128xf32>
      %345 = arith.addf %344, %343 : vector<8x128xf32>
      %346 = arith.divf %344, %345 : vector<8x128xf32>
      %347 = vector.extract_strided_slice %329 {offsets = [0, 256], sizes = [8, 128], strides = [1, 1]} : vector<8x384xf32> to vector<8x128xf32>
      %348 = vector.extract_strided_slice %330 {offsets = [0, 256], sizes = [8, 128], strides = [1, 1]} : vector<8x384xf32> to vector<8x128xf32>
      %349 = vector.broadcast %22 : vector<1x128xf32> to vector<8x128xf32>
      %350 = arith.addf %348, %349 : vector<8x128xf32>
      %351 = arith.mulf %338, %350 : vector<8x128xf32>
      %352 = arith.addf %347, %351 : vector<8x128xf32>
      %353 = math.tanh %352 : vector<8x128xf32>
      %cst_78 = arith.constant 1.000000e+00 : f32
      %354 = vector.broadcast %cst_78 : f32 to vector<8x128xf32>
      %355 = arith.subf %354, %346 : vector<8x128xf32>
      %356 = arith.mulf %355, %353 : vector<8x128xf32>
      %357 = arith.mulf %346, %326 : vector<8x128xf32>
      %358 = arith.addf %356, %357 : vector<8x128xf32>
      %359 = arith.addi %5, %c7_i32 : i32
      %360 = vector.broadcast %359 : i32 to vector<8x1xi32>
      %361 = arith.cmpi slt, %360, %21 : vector<8x1xi32>
      %cst_79 = arith.constant 0.000000e+00 : f32
      %362 = vector.shape_cast %361 : vector<8x1xi1> to vector<8x1xi1>
      %363 = vector.broadcast %362 : vector<8x1xi1> to vector<8x128xi1>
      %364 = vector.broadcast %cst_79 : f32 to vector<8x128xf32>
      %365 = arith.select %363, %358, %364 : vector<8x128xi1>, vector<8x128xf32>
      %366 = arith.addf %323, %365 : vector<8x128xf32>
      %367 = vector.shape_cast %361 : vector<8x1xi1> to vector<8x1xi1>
      %368 = vector.broadcast %367 : vector<8x1xi1> to vector<8x128xi1>
      %369 = arith.select %368, %358, %326 : vector<8x128xi1>, vector<8x128xf32>
      %c8_i32_80 = arith.constant 8 : i32
      %c0_81 = arith.constant 0 : index
      %c0_82 = arith.constant 0 : index
      %370 = vector.load %arg14[%c0_81, %c0_82] : memref<8x128xf32, #tpu.memory_space<vmem>>, vector<8x128xf32>
      tpu.vector_store %arg14[%c0_81, %c0_82], %369 {strides = array<i32>} : memref<8x128xf32, #tpu.memory_space<vmem>>, vector<8x128xf32>,
      %c0_83 = arith.constant 0 : index
      %c0_84 = arith.constant 0 : index
      %371 = vector.load %arg15[%c0_83, %c0_84] : memref<8x128xf32, #tpu.memory_space<vmem>>, vector<8x128xf32>
      tpu.vector_store %arg15[%c0_83, %c0_84], %366 {strides = array<i32>} : memref<8x128xf32, #tpu.memory_space<vmem>>, vector<8x128xf32>,
    } else {
    }
    %c0_i32_2 = arith.constant 0 : i32
    %9 = arith.cmpi eq, %arg1, %c0_i32_2 : i32
    %10 = arith.extui %9 : i1 to i32
    %c0_i32_3 = arith.constant 0 : i32
    %11 = arith.cmpi ne, %10, %c0_i32_3 : i32
    scf.if %11 {
      %c0 = arith.constant 0 : index
      %c0_4 = arith.constant 0 : index
      %12 = vector.load %arg15[%c0, %c0_4] : memref<8x128xf32, #tpu.memory_space<vmem>>, vector<8x128xf32>
      %cst = arith.constant 1.250000e-01 : f32
      %13 = vector.broadcast %cst : f32 to vector<8x128xf32>
      %14 = arith.mulf %12, %13 : vector<8x128xf32>
      %c0_5 = arith.constant 0 : index
      %c0_6 = arith.constant 0 : index
      %15 = vector.load %arg11[%c0_5, %c0_6] : memref<8x128xf32, #tpu.memory_space<vmem>>, vector<8x128xf32>
      tpu.vector_store %arg11[%c0_5, %c0_6], %14 {strides = array<i32>} : memref<8x128xf32, #tpu.memory_space<vmem>>, vector<8x128xf32>,
      %c0_7 = arith.constant 0 : index
      %c0_8 = arith.constant 0 : index
      %16 = vector.load %arg9[%c0_7, %c0_8] : memref<128x128xf32, #tpu.memory_space<vmem>>, vector<128x128xf32>
      %cst_9 = arith.constant dense<0.000000e+00> : vector<8x128xf32>
      %17 = tpu.matmul %14, %16, %cst_9 {dimension_numbers = #tpu.dot_dimension_numbers<[1], [0], [0], [1], [0, 0, 1, 1], [], []>} : vector<8x128xf32>, vector<128x128xf32>, vector<8x128xf32> -> vector<8x128xf32>
      %c0_10 = arith.constant 0 : index
      %c0_11 = arith.constant 0 : index
      %18 = vector.load %arg10[%c0_10, %c0_11] : memref<1x128xf32, #tpu.memory_space<vmem>>, vector<1x128xf32>
      %19 = vector.broadcast %18 : vector<1x128xf32> to vector<8x128xf32>
      %20 = arith.addf %17, %19 : vector<8x128xf32>
      %c0_12 = arith.constant 0 : index
      %c0_13 = arith.constant 0 : index
      %21 = vector.load %arg12[%c0_12, %c0_13] : memref<8x128xf32, #tpu.memory_space<vmem>>, vector<8x128xf32>
      tpu.vector_store %arg12[%c0_12, %c0_13], %20 {strides = array<i32>} : memref<8x128xf32, #tpu.memory_space<vmem>>, vector<8x128xf32>,
    } else {
    }
    return
  }
  func.func @transform_0(%arg0: i32, %arg1: i32, %arg2: memref<1xi32, #tpu.memory_space<smem>>) -> (i32, i32, i32) {
    %c0_i32 = arith.constant 0 : i32
    %c0_i32_0 = arith.constant 0 : i32
    return %arg1, %arg0, %c0_i32 : i32, i32, i32
  }
  func.func @transform_1(%arg0: i32, %arg1: i32, %arg2: memref<1xi32, #tpu.memory_space<smem>>) -> (i32, i32) {
    %c0_i32 = arith.constant 0 : i32
    %c0_i32_0 = arith.constant 0 : i32
    return %arg0, %c0_i32 : i32, i32
  }
  func.func @transform_2(%arg0: i32, %arg1: i32, %arg2: memref<1xi32, #tpu.memory_space<smem>>) -> (i32, i32) {
    %c0_i32 = arith.constant 0 : i32
    %c0_i32_0 = arith.constant 0 : i32
    %c0_i32_1 = arith.constant 0 : i32
    return %c0_i32, %c0_i32_0 : i32, i32
  }
  func.func @transform_3(%arg0: i32, %arg1: i32, %arg2: memref<1xi32, #tpu.memory_space<smem>>) -> (i32, i32) {
    %c0_i32 = arith.constant 0 : i32
    %c0_i32_0 = arith.constant 0 : i32
    %c0_i32_1 = arith.constant 0 : i32
    return %c0_i32, %c0_i32_0 : i32, i32
  }
  func.func @transform_4(%arg0: i32, %arg1: i32, %arg2: memref<1xi32, #tpu.memory_space<smem>>) -> (i32, i32) {
    %c0_i32 = arith.constant 0 : i32
    %c0_i32_0 = arith.constant 0 : i32
    %c0_i32_1 = arith.constant 0 : i32
    return %c0_i32, %c0_i32_0 : i32, i32
  }
  func.func @transform_5(%arg0: i32, %arg1: i32, %arg2: memref<1xi32, #tpu.memory_space<smem>>) -> (i32, i32) {
    %c0_i32 = arith.constant 0 : i32
    %c0_i32_0 = arith.constant 0 : i32
    %c0_i32_1 = arith.constant 0 : i32
    return %c0_i32, %c0_i32_0 : i32, i32
  }
  func.func @transform_6(%arg0: i32, %arg1: i32, %arg2: memref<1xi32, #tpu.memory_space<smem>>) -> (i32, i32) {
    %c0_i32 = arith.constant 0 : i32
    %c0_i32_0 = arith.constant 0 : i32
    %c0_i32_1 = arith.constant 0 : i32
    return %c0_i32, %c0_i32_0 : i32, i32
  }
  func.func @transform_7(%arg0: i32, %arg1: i32, %arg2: memref<1xi32, #tpu.memory_space<smem>>) -> (i32, i32) {
    %c0_i32 = arith.constant 0 : i32
    %c0_i32_0 = arith.constant 0 : i32
    %c0_i32_1 = arith.constant 0 : i32
    return %c0_i32, %c0_i32_0 : i32, i32
  }
  func.func @transform_8(%arg0: i32, %arg1: i32, %arg2: memref<1xi32, #tpu.memory_space<smem>>) -> (i32, i32) {
    %c0_i32 = arith.constant 0 : i32
    %c0_i32_0 = arith.constant 0 : i32
    return %arg0, %c0_i32 : i32, i32
  }
  func.func @transform_9(%arg0: i32, %arg1: i32, %arg2: memref<1xi32, #tpu.memory_space<smem>>) -> (i32, i32) {
    %c0_i32 = arith.constant 0 : i32
    %c0_i32_0 = arith.constant 0 : i32
    return %arg0, %c0_i32 : i32, i32
  }
}

</mosaic_0001>

<bundles_post_ra>
// kernel: tpu_custom_call.1
= control target key start
LH: loop header
LB: loop body
LE: loop exit
PB: predicated region body
PF: predicated region fallthrough
CT: control target
= control target key end

     0   :  { %17 = vsyncpa [#allocation8], 0  ;;  %s3968_s0 = inlined_call_operand.<no memory space> [shape: s32[1], index: 0, kind: input, shape index: {}]   ;;  %s3969_s1 = inlined_call_operand.hbm [shape: f32[8,8,16], index: 1, kind: input, shape index: {}]   ;;  %s3970_s2 = inlined_call_operand.vmem [shape: s32[8,1], index: 2, kind: input, shape index: {}]   ;;  %s3971_s3 = inlined_call_operand.hbm [shape: f32[16,384], index: 3, kind: input, shape index: {}]   ;;  %s3972_s4 = inlined_call_operand.hbm [shape: f32[128,384], index: 4, kind: input, shape index: {}]   ;;  %s3973_s5 = inlined_call_operand.vmem [shape: f32[1,384], index: 5, kind: input, shape index: {}]   ;;  %s3974_s6 = inlined_call_operand.vmem [shape: f32[1,128], index: 6, kind: input, shape index: {}]   ;;  %s3975_s7 = inlined_call_operand.hbm [shape: f32[128,128], index: 7, kind: input, shape index: {}]   ;;  %s3976_s8 = inlined_call_operand.vmem [shape: f32[1,128], index: 8, kind: input, shape index: {}]   ;;  %s3977_s9 = inlined_call_operand.hbm [shape: f32[8,128], index: 9, kind: output, shape index: {0}]   ;;  %s3978_s10 = inlined_call_operand.hbm [shape: f32[8,128], index: 10, kind: output, shape index: {1}]  }
   0x1   :  { %18 = vsyncpa [#allocation11], 0 }
   0x2   :  { %19 = vsyncpa [#allocation14], 0 }
   0x3   :  { %20 = vsyncpa [#allocation9], 0 }
   0x4   :  { %21 = vsyncpa [#allocation17], 0  ;;  %s3304_s13 = smov [#allocation10]   ;;  %s3162_s17 = scalar_lea.hbm %s3971_s3, 768 }
   0x5   :  { %s41_s14 = sshll.u32 %s3304_s13, 4  ;;  %p3163_p0 = scmp.ne.s32.totalorder %s3971_s3, %s3162_s17  ;;  %s42_s14 = int_to_ptr.vmem [resolvable:$true] %s41_s14 }
   0x6   :  { %p3166_p1 = scmp.lt.u32.totalorder %s3162_s17, %s3971_s3 }
   0x8   :  { %p3168_p2 = pnand %p3166_p1, %p3163_p0 }
   0xa   :  { %3171 = shalt.err (!%p3168_p2)
}
   0xb   :  { %s3172_s22 = scalar_lea.vmem %s42_s14, 768  ;;  %p3177_p4 = scmp.lt.s32.totalorder %s42_s14, %s42_s14 }
   0xc   :  { %p3173_p3 = scmp.ne.s32.totalorder %s42_s14, %s3172_s22  ;;  %p3178_p5 = scmp.lt.s32.totalorder %s3172_s22, %s3172_s22 }
   0xe   :  { %p3179_p6 = por %p3178_p5, %p3177_p4 }
  0x10   :  { %p3180_p7 = pnand %p3179_p6, %p3173_p3 }
  0x12   :  { %3183 = shalt.err (!%p3180_p7)
}
  0x13   :  { %s3305_s23 = smov 384   ;;  %s3306_s24 = smov 24  }
  0x14   :  { %47 = dma.hbm_to_vmem [thread:$0]  %s3971_s3, 768, %s42_s14, [#allocation11], %s3305_s23, %s3305_s23, %s3306_s24  }
  0x15   :  { %s3307_s27 = smov [#allocation7]   ;;  %s3184_s11 = scalar_lea.hbm %s3969_s1, 1024 }
  0x16   :  { %s27_s28 = sshll.u32 %s3307_s27, 4  ;;  %p3185_p8 = scmp.ne.s32.totalorder %s3969_s1, %s3184_s11  ;;  %s28_s28 = int_to_ptr.vmem [resolvable:$true] %s27_s28 }
  0x17   :  { %p3188_p9 = scmp.lt.u32.totalorder %s3184_s11, %s3969_s1 }
  0x19   :  { %p3190_p10 = pnand %p3188_p9, %p3185_p8 }
  0x1b   :  { %3193 = shalt.err (!%p3190_p10)
}
  0x1c   :  { %s3194_s17 = scalar_lea.vmem %s28_s28, 1024  ;;  %p3199_p12 = scmp.lt.s32.totalorder %s28_s28, %s28_s28 }
  0x1d   :  { %p3195_p11 = scmp.ne.s32.totalorder %s28_s28, %s3194_s17  ;;  %p3200_p13 = scmp.lt.s32.totalorder %s3194_s17, %s3194_s17 }
  0x1f   :  { %p3201_p0 = por %p3200_p13, %p3199_p12 }
  0x21   :  { %p3202_p1 = pnand %p3201_p0, %p3195_p11 }
  0x23   :  { %3205 = shalt.err (!%p3202_p1)
}
  0x24   :  { %s3308_s3 = smov 128   ;;  %s3309_s14 = smov 8  }
  0x25   :  { %33 = dma.hbm_to_vmem [thread:$0]  %s3969_s1, 1024, %s28_s28, [#allocation8], %s3308_s3, %s3308_s3, %s3309_s14  }
  0x26   :  { %s3310_s20 = smov [#allocation12]   ;;  %s3311_s22 = smov [#allocation13]  }
  0x27   :  { %s53_s21 = sshll.u32 %s3310_s20, 4  ;;  %s69_s25 = sshll.u32 %s3311_s22, 4  ;;  %s54_s21 = int_to_ptr.vmem [resolvable:$true] %s53_s21  ;;  %s3406_s25 = int_to_ptr.vmem [resolvable:$true] %s69_s25 }
  0x28   :  { %s3206_s29 = scalar_lea.hbm %s3972_s4, 6144 }
  0x29   :  { %p3207_p2 = scmp.ne.s32.totalorder %s3972_s4, %s3206_s29  ;;  %p3210_p3 = scmp.lt.u32.totalorder %s3206_s29, %s3972_s4 }
  0x2b   :  { %p3212_p4 = pnand %p3210_p3, %p3207_p2 }
  0x2d   :  { %3215 = shalt.err (!%p3212_p4)
}
  0x2e   :  { %s3216_s1 = scalar_lea.vmem %s54_s21, 6144  ;;  %p3221_p6 = scmp.lt.s32.totalorder %s54_s21, %s54_s21 }
  0x2f   :  { %p3217_p5 = scmp.ne.s32.totalorder %s54_s21, %s3216_s1  ;;  %p3222_p7 = scmp.lt.s32.totalorder %s3216_s1, %s3216_s1 }
  0x31   :  { %p3223_p8 = por %p3222_p7, %p3221_p6 }
  0x33   :  { %p3224_p9 = pnand %p3223_p8, %p3217_p5 }
  0x35   :  { %3227 = shalt.err (!%p3224_p9)
}
  0x36   :  { %59 = dma.hbm_to_vmem [thread:$0]  %s3972_s4, 6144, %s54_s21, [#allocation11], %s3305_s23, %s3305_s23, %s3306_s24  }
  0x37   :  { %s3228_s18 = scalar_lea.hbm %s3975_s7, 2048 }
  0x38   :  { %p3229_p10 = scmp.ne.s32.totalorder %s3975_s7, %s3228_s18  ;;  %p3232_p11 = scmp.lt.u32.totalorder %s3228_s18, %s3975_s7 }
  0x3a   :  { %p3234_p12 = pnand %p3232_p11, %p3229_p10 }
  0x3c   :  { %3237 = shalt.err (!%p3234_p12)
}
  0x3d   :  { %s3238_s27 = scalar_lea.vmem %s3406_s25, 2048  ;;  %p3243_p0 = scmp.lt.s32.totalorder %s3406_s25, %s3406_s25 }
  0x3e   :  { %p3239_p13 = scmp.ne.s32.totalorder %s3406_s25, %s3238_s27  ;;  %p3244_p1 = scmp.lt.s32.totalorder %s3238_s27, %s3238_s27 }
  0x40   :  { %p3245_p2 = por %p3244_p1, %p3243_p0 }
  0x42   :  { %p3246_p3 = pnand %p3245_p2, %p3239_p13 }
  0x44   :  { %3249 = shalt.err (!%p3246_p3)
}
  0x45   :  { %75 = dma.hbm_to_vmem [thread:$0]  %s3975_s7, 2048, %s3406_s25, [#allocation14], %s3308_s3, %s3308_s3, %s3309_s14  }
  0x46   :  { %3294 = dma.done.wait [#allocation8], 1024  }
  0x47   :  { %3295 = vsyncadd [#allocation8], 4294966272 }
  0x48   :  { %3296 = dma.done.wait [#allocation11], 6912  }
  0x49   :  { %3297 = vsyncadd [#allocation11], 4294960384 }
  0x4a   :  { %3298 = dma.done.wait [#allocation14], 2048  }
  0x4b   :  { %3299 = vsyncadd [#allocation14], 4294965248  ;;  %v3312_v0 = vmov 0.0   ;;  %p2014_p4 = scmp.le.s32.totalorder %s3968_s0, 0 }
  0x4c   :  { %94 = vst [vmem:[#allocation3] sm:$0xff] %v3312_v0  ;;  %95 = vst [vmem:[#allocation4] sm:$0xff] %v3312_v0  ;;  %v111_v1 = vld [vmem:[#allocation10 + $0x8] sm:$0xff] (!%p2014_p4)  ;;  %v114_v2 = vld [vmem:[#allocation10 + $0x20] sm:$0xff] (!%p2014_p4)  ;;  %v3313_v6 = vmov (!%p2014_p4), 0.0   ;;  %vm133_vm0 = vcmask (!%p2014_p4), 130048  }
  0x4d   :  { %101 = sbr.rel (%p2014_p4) target bundleno = 2198 (0x896), region = 57  ;;  %v110_v3 = vld [vmem:[#allocation10] sm:$0xff] (!%p2014_p4)  ;;  %v2551_v4 = vpack.c.bf16 (!%p2014_p4), %v114_v2, %v111_v1  ;;  %v113_v5 = vld [vmem:[#allocation10 + $0x18] sm:$0xff] (!%p2014_p4)  ;;  %222 = vmatprep.mubr.f32.mxu0 (!%p2014_p4), %v3313_v6  ;;  %v406_v10 = vld [vmem:[#allocation12 + $0x20] sm:$0xff] (!%p2014_p4)  ;;  %v3314_v13 = vmov (!%p2014_p4), 0   ;;  %v3315_v50 = vmov (!%p2014_p4), 0.0|0.0  }
  0x4e   :  { %v102_v7 = vld [vmem:[#allocation7] sm:$0xff] (!%p2014_p4)  ;;  %v403_v8 = vld [vmem:[#allocation12 + $0x8] sm:$0xff] (!%p2014_p4)  ;;  %v2553_v9 = vpack.c.bf16 (!%p2014_p4), %v113_v5, %v110_v3  ;;  %v402_v11 = vld [vmem:[#allocation12] sm:$0xff] (!%p2014_p4)  ;;  %3080 = vset.pattern.permute.xlu0 (!%p2014_p4), %v3314_v13  ;;  %3081 = vset.pattern.permute.xlu1 (!%p2014_p4), %v3314_v13  ;;  %vm3316_vm5 = vmmov (!%p2014_p4), 0  }
  0x4f   :  { %v405_v12 = vld [vmem:[#allocation12 + $0x18] sm:$0xff] (!%p2014_p4)  ;;  %2224 = vmatprep.mubr.msk.f32.mxu1 (!%p2014_p4), %vm133_vm0, %v102_v7  ;;  %2552 = vmatprep.subr.bf16.mxu0 (!%p2014_p4), %v2551_v4  ;;  %v3451_v14 = vpack.c.bf16 (!%p2014_p4), %v406_v10, %v403_v8  ;;  %v412_v16 = vld [vmem:[#allocation12 + $0x50] sm:$0xff] (!%p2014_p4)  ;;  %v411_v20 = vld [vmem:[#allocation12 + $0x48] sm:$0xff] (!%p2014_p4) }
  0x50   :  { %v409_v15 = vld [vmem:[#allocation12 + $0x38] sm:$0xff] (!%p2014_p4)  ;;  %2554 = vmatpush1.bf16.msra.mxu0 (!%p2014_p4), %v2553_v9  ;;  %v3454_v17 = vpack.c.bf16 (!%p2014_p4), %v405_v12, %v402_v11  ;;  %v408_v19 = vld [vmem:[#allocation12 + $0x30] sm:$0xff] (!%p2014_p4)  ;;  %v415_v21 = vld [vmem:[#allocation12 + $0x68] sm:$0xff] (!%p2014_p4) }
  0x51   :  { %2560 = vmatprep.subr.bf16.mxu0 (!%p2014_p4), %v3451_v14  ;;  %v3457_v18 = vpack.c.bf16 (!%p2014_p4), %v412_v16, %v409_v15  ;;  %v418_v22 = vld [vmem:[#allocation12 + $0x80] sm:$0xff] (!%p2014_p4)  ;;  %v103_v23 = vld [vmem:[#allocation7 + $0x8] sm:$0xff] (!%p2014_p4)  ;;  %v3462_v24 = vpack.c.bf16 (!%p2014_p4), %v411_v20, %v408_v19  ;;  %v424_v29 = vld [vmem:[#allocation12 + $0xb0] sm:$0xff] (!%p2014_p4) }
  0x52   :  { %v3465_v25 = vpack.c.bf16 (!%p2014_p4), %v418_v22, %v415_v21  ;;  %v414_v26 = vld [vmem:[#allocation12 + $0x60] sm:$0xff] (!%p2014_p4)  ;;  %v417_v27 = vld [vmem:[#allocation12 + $0x78] sm:$0xff] (!%p2014_p4)  ;;  %v420_v36 = vld [vmem:[#allocation12 + $0x90] sm:$0xff] (!%p2014_p4) }
  0x53   :  { %2015 = vmatmul.mubr.msk.f32.vlgmr.msra.gmra.mrb[0].mxu0 (!%p2014_p4), %vm133_vm0, %v102_v7  ;;  %v421_v28 = vld [vmem:[#allocation12 + $0x98] sm:$0xff] (!%p2014_p4)  ;;  %v112_v30 = vld [vmem:[#allocation10 + $0x10] sm:$0xff] (!%p2014_p4)  ;;  %v3470_v33 = vpack.c.bf16 (!%p2014_p4), %v417_v27, %v414_v26  ;;  %v423_v37 = vld [vmem:[#allocation12 + $0xa8] sm:$0xff] (!%p2014_p4) }
  0x54   :  { %2562 = vmatpush1.bf16.msra.mxu0 %v3454_v17  ;;  %228 = vmatprep.mubr.f32.mxu0 %v3313_v6  ;;  %v115_v31 = vld [vmem:[#allocation10 + $0x28] sm:$0xff]  ;;  %v104_v32 = vld [vmem:[#allocation7 + $0x10] sm:$0xff]  ;;  %v3473_v35 = vpack.c.bf16 %v424_v29, %v421_v28  ;;  %v404_v38 = vld [vmem:[#allocation12 + $0x10] sm:$0xff]  ;;  %v3480_v44 = vpack.c.bf16 %v423_v37, %v420_v36 }
  0x55   :  { %2564 = vmatprep.subr.bf16.mxu0 %v3457_v18  ;;  %v2555_v34 = vpack.c.bf16 %v115_v31, %v112_v30  ;;  %v427_v39 = vld [vmem:[#allocation12 + $0xc8] sm:$0xff]  ;;  %v430_v40 = vld [vmem:[#allocation12 + $0xe0] sm:$0xff]  ;;  %v413_v46 = vld [vmem:[#allocation12 + $0x58] sm:$0xff] }
  0x56   :  { %v407_v41 = vld [vmem:[#allocation12 + $0x28] sm:$0xff]  ;;  %v410_v45 = vld [vmem:[#allocation12 + $0x40] sm:$0xff]  ;;  %v3483_v47 = vpack.c.bf16 %v430_v40, %v427_v39  ;;  %v429_v49 = vld [vmem:[#allocation12 + $0xd8] sm:$0xff] }
  0x57   :  { %2016 = vmatmul.mubr.msk.f32.gmra.mrb[2].mxu0 %vm133_vm0, %v103_v23  ;;  %2556 = vmatprep.subr.bf16.mxu1 %v2555_v34  ;;  %v3476_v42 = vpack.c.bf16 %v407_v41, %v404_v38  ;;  %v105_v43 = vld [vmem:[#allocation7 + $0x18] sm:$0xff]  ;;  %v426_v48 = vld [vmem:[#allocation12 + $0xc0] sm:$0xff]  ;;  %v433_v51 = vld [vmem:[#allocation12 + $0xf8] sm:$0xff]  ;;  %v3489_v53 = vpack.c.bf16 %v413_v46, %v410_v45 }
  0x58   :  { %2566 = vmatpush1.bf16.msra.mxu0 %v3462_v24  ;;  %234 = vmatprep.mubr.f32.mxu0 %v3313_v6  ;;  %v436_v52 = vld [vmem:[#allocation12 + $0x110] sm:$0xff]  ;;  %v3493_v55 = vpack.c.bf16 %v429_v49, %v426_v48  ;;  %v419_v57 = vld [vmem:[#allocation12 + $0x88] sm:$0xff]  ;;  %v3502_v61 = vld [vmem:[%s3970_s2] sm:$0xff]  ;;  %v118_v48 = vlaneseq }
  0x59   :  { %2568 = vmatprep.subr.bf16.mxu0 %v3465_v25  ;;  %2558 = vmatpush3.bf16.msra.mxu1 %v2555_v34  ;;  %v106_v54 = vld [vmem:[#allocation7 + $0x20] sm:$0xff]  ;;  %v3496_v58 = vpack.c.bf16 %v436_v52, %v433_v51  ;;  %v435_v60 = vld [vmem:[#allocation12 + $0x108] sm:$0xff]  ;;  %v442_v63 = vld [vmem:[#allocation12 + $0x140] sm:$0xff]  ;;  %vm2034_vm1 = vcmp.gt.s32.totalorder %v3502_v61, 0  ;;  %vm2037_vm2 = vcmp.gt.s32.totalorder %v3502_v61, 1  ;;  %vm2046_vm3 = vcmp.gt.s32.totalorder %v3502_v61, 4 }
  0x5a   :  { %2591 = vmatprep.subr.bf16.mxu1 %v3315_v50  ;;  %v416_v56 = vld [vmem:[#allocation12 + $0x70] sm:$0xff]  ;;  %v439_v62 = vld [vmem:[#allocation12 + $0x128] sm:$0xff]  ;;  %v626_v2 = vsel %vm2034_vm1, 1, %v3314_v13  ;;  %v107_v3 = vld [vmem:[#allocation7 + $0x28] sm:$0xff]  ;;  %v804_v16 = vsel %vm2037_vm2, 1, %v3314_v13  ;;  %v1338_v29 = vsel %vm2046_vm3, 1, %v3314_v13 }
  0x5b   :  { %2017 = vmatmul.mubr.msk.f32.gmra.mrb[4].mxu0 %vm133_vm0, %v104_v32  ;;  %v432_v59 = vld [vmem:[#allocation12 + $0xf0] sm:$0xff]  ;;  %v3508_v1 = vpack.c.bf16 %v419_v57, %v416_v56  ;;  %v422_v5 = vld [vmem:[#allocation12 + $0xa0] sm:$0xff]  ;;  %v425_v7 = vld [vmem:[#allocation12 + $0xb8] sm:$0xff]  ;;  %v3517_v8 = vpack.c.bf16 %v442_v63, %v439_v62  ;;  %628 = vperm.xlu0 %3080, %v626_v2   ;;  %vm2052_vm4 = vcmp.gt.s32.totalorder %v3502_v61, 6  ;;  %v119_v49 = vshrl.u32 %v118_v48, 7 }
  0x5c   :  { %2570 = vmatpush1.bf16.msra.mxu0 %v3470_v33  ;;  %240 = vmatprep.mubr.f32.mxu0 %v3313_v6  ;;  %v3513_v4 = vpack.c.bf16 %v435_v60, %v432_v59  ;;  %v438_v9 = vld [vmem:[#allocation12 + $0x120] sm:$0xff]  ;;  %v441_v10 = vld [vmem:[#allocation12 + $0x138] sm:$0xff]  ;;  %v448_v12 = vld [vmem:[#allocation12 + $0x170] sm:$0xff]  ;;  %v3523_v15 = vpack.c.bf16 %v425_v7, %v422_v5  ;;  %v1694_v37 = vsel %vm2052_vm4, 1, %v3314_v13  ;;  %vm2040_vm7 = vcmp.gt.s32.totalorder %v3502_v61, 2 }
  0x5d   :  { %2572 = vmatprep.subr.bf16.mxu0 %v3473_v35  ;;  %2225 = vmatmul.mubr.msk.f32.vlgmr.msra.gmra.mrb[0].mxu1 %vm133_vm0, %v103_v23  ;;  %v445_v11 = vld [vmem:[#allocation12 + $0x158] sm:$0xff]  ;;  %v108_v19 = vld [vmem:[#allocation7 + $0x30] sm:$0xff]  ;;  %v3528_v20 = vpack.c.bf16 %v441_v10, %v438_v9  ;;  %v428_v21 = vld [vmem:[#allocation12 + $0xd0] sm:$0xff]  ;;  %v128_v51 = vsub.s32 2, %v119_v49  ;;  %v124_v7 = vsub.s32 1, %v119_v49  ;;  %vm2043_vm8 = vcmp.gt.s32.totalorder %v3502_v61, 3 }
  0x5e   :  { %2593 = vmatpush3.bf16.msra.mxu1 %v3476_v42  ;;  %2227 = vmatprep.mubr.msk.f32.mxu1 %vm133_vm0, %v104_v32  ;;  %v431_v22 = vld [vmem:[#allocation12 + $0xe8] sm:$0xff]  ;;  %v3532_v23 = vpack.c.bf16 %v448_v12, %v445_v11  ;;  %v444_v26 = vld [vmem:[#allocation12 + $0x150] sm:$0xff]  ;;  %v434_v32 = vld [vmem:[#allocation12 + $0x100] sm:$0xff]  ;;  %vm2049_vm9 = vcmp.gt.s32.totalorder %v3502_v61, 5  ;;  %vm2055_vm10 = vcmp.gt.s32.totalorder %v3502_v61, 7 }
  0x5f   :  { %2018 = vmatmul.mubr.msk.f32.gmra.mrb[6].mxu0 %vm133_vm0, %v105_v43  ;;  %2594 = vmatprep.subr.bf16.mxu1 %v3315_v50  ;;  %v447_v27 = vld [vmem:[#allocation12 + $0x168] sm:$0xff]  ;;  %v3538_v28 = vpack.c.bf16 %v431_v22, %v428_v21  ;;  %v437_v34 = vld [vmem:[#allocation12 + $0x118] sm:$0xff]  ;;  %v3556_v38 = vld [vmem:[#allocation3] sm:$0xff] }
  0x60   :  { %2574 = vmatpush1.bf16.msra.mxu0 %v3480_v44  ;;  %246 = vmatprep.mubr.f32.mxu0 %v3313_v6  ;;  %v109_v30 = vld [vmem:[#allocation7 + $0x38] sm:$0xff]  ;;  %v3543_v31 = vpack.c.bf16 %v447_v27, %v444_v26  ;;  %v3551_v36 = vpack.c.bf16 %v437_v34, %v434_v32  ;;  %v440_v39 = vld [vmem:[#allocation12 + $0x130] sm:$0xff]  ;;  %v449_v45 = vld [vmem:[#allocation12 + $0x178] sm:$0xff] }
  0x61   :  { %2576 = vmatprep.subr.bf16.mxu0 %v3483_v47  ;;  %2228 = vmatmul.mubr.msk.f32.gmra.mrb[2].mxu1 %vm133_vm0, %v105_v43  ;;  %v443_v40 = vld [vmem:[#allocation12 + $0x148] sm:$0xff]  ;;  %v446_v43 = vld [vmem:[#allocation12 + $0x160] sm:$0xff] }
  0x62   :  { %2596 = vmatpush3.bf16.msra.mxu1 %v3489_v53  ;;  %2230 = vmatprep.mubr.msk.f32.mxu1 %vm133_vm0, %v106_v54  ;;  %v3563_v41 = vpack.c.bf16 %v443_v40, %v440_v39  ;;  %v3572_v46 = vpack.c.bf16 %v449_v45, %v446_v43  ;;  %v116_v52 = vld [vmem:[%s3973_s5] sm:$0x7] }
  0x63   :  { %2019 = vmatmul.mubr.msk.f32.gmra.mrb[8].mxu0 %vm133_vm0, %v106_v54  ;;  %2597 = vmatprep.subr.bf16.mxu1 %v3315_v50  ;;  %v129_v54 = vrot.slane %v116_v52, %v128_v51  ;;  %v3626_v21 = vrot.slane %v116_v52, %v124_v7 }
  0x64   :  { %2578 = vmatpush1.bf16.msra.mxu0 %v3493_v55  ;;  %252 = vmatprep.mubr.f32.mxu0 %v3313_v6 }
  0x65   :  { %2580 = vmatprep.subr.bf16.mxu0 %v3496_v58  ;;  %806 = vperm.xlu0 %3080, %v804_v16  }
  0x66   :  { %2599 = vmatpush3.bf16.msra.mxu1 %v3508_v1 }
  0x67   :  { %2020 = vmatmul.mubr.msk.f32.gmra.mrb[10].mxu0 %vm133_vm0, %v107_v3  ;;  %2600 = vmatprep.subr.bf16.mxu1 %v3315_v50 }
  0x68   :  { %2582 = vmatpush1.bf16.msra.mxu0 %v3513_v4  ;;  %258 = vmatprep.mubr.f32.mxu0 %v3313_v6 }
  0x69   :  { %2584 = vmatprep.subr.bf16.mxu0 %v3517_v8  ;;  %2231 = vmatmul.mubr.msk.f32.gmra.mrb[4].mxu1 %vm133_vm0, %v107_v3  ;;  %v120_v3 = vsub.s32 0, %v119_v49  ;;  %v3637_v49 = vld [vmem:[%s3974_s6] ss:$0 sm:$0xff] }
  0x6a   :  { %2602 = vmatpush3.bf16.msra.mxu1 %v3523_v15  ;;  %1340 = vperm.xlu0 %3080, %v1338_v29  }
  0x6b   :  { %2021 = vmatmul.mubr.msk.f32.gmra.mrb[12].mxu0 %vm133_vm0, %v108_v19  ;;  %2603 = vmatprep.subr.bf16.mxu1 %v3315_v50  ;;  %v3622_v11 = vrot.slane %v116_v52, %v120_v3 }
  0x6c   :  { %2586 = vmatpush1.bf16.msra.mxu0 %v3528_v20  ;;  %264 = vmatprep.mubr.f32.mxu0 %v3313_v6 }
  0x6d   :  { %2588 = vmatprep.subr.bf16.mxu0 %v3532_v23  ;;  %2233 = vmatprep.mubr.msk.f32.mxu1 %vm133_vm0, %v108_v19 }
  0x6e   :  { %2605 = vmatpush3.bf16.msra.mxu1 %v3538_v28  ;;  %1696 = vperm.xlu0 %3080, %v1694_v37  }
  0x6f   :  { %2022 = vmatmul.mubr.msk.f32.gmra.mrb[14].mxu0 %vm133_vm0, %v109_v30  ;;  %2606 = vmatprep.subr.bf16.mxu1 %v3315_v50 }
  0x70   :  { %2590 = vmatpush1.bf16.msra.mxu0 %v3543_v31  ;;  %519 = vmatprep.mubr.f32.mxu0 %v3313_v6 }
  0x71   :  { %2234 = vmatmul.mubr.msk.f32.gmra.mrb[6].mxu1 %vm133_vm0, %v109_v30  ;;  %2616 = vmatprep.subr.bf16.mxu0 %v3451_v14 }
  0x72   :  { %2608 = vmatpush3.bf16.msra.mxu1 %v3551_v36  ;;  %2268 = vmatprep.mubr.msk.f32.mxu1 %vm3316_vm5, %v3313_v6 }
  0x73   :  { %520 = vmatmul.mubr.f32.vlgmr.msra.gmra.mrb[0].mxu0 %v3556_v38  ;;  %2609 = vmatprep.subr.bf16.mxu1 %v3315_v50 }
  0x74   :  { %702 = vmatprep.mubr.f32.mxu0 %v3313_v6  ;;  %2618 = vmatpush1.bf16.msra.mxu0 %v3454_v17 }
  0x75   :  { %2620 = vmatprep.subr.bf16.mxu0 %v3457_v18 }
  0x76   :  { %2611 = vmatpush3.bf16.msra.mxu1 %v3563_v41 }
  0x77   :  { %2612 = vmatprep.subr.bf16.mxu1 %v3315_v50 }
  0x78   :  { %2622 = vmatpush1.bf16.msra.mxu0 %v3462_v24 }
  0x79   :  { %2624 = vmatprep.subr.bf16.mxu0 %v3465_v25 }
  0x7a   :  { %2614 = vmatpush3.bf16.msra.mxu1 %v3572_v46 }
  0x7b   :  { %2647 = vmatprep.subr.bf16.mxu1 %v3315_v50 }
  0x7c   :  { %2626 = vmatpush1.bf16.msra.mxu0 %v3470_v33 }
  0x7d   :  { %2269 = vmatmul.mubr.f32.vlgmr.msra.gmra.mrb[8].mxu1 %v3556_v38  ;;  %2628 = vmatprep.subr.bf16.mxu0 %v3473_v35 }
  0x7e   :  { %2649 = vmatpush3.bf16.msra.mxu1 %v3476_v42  ;;  %2303 = vmatprep.mubr.msk.f32.mxu1 %vm3316_vm5, %v3313_v6 }
  0x7f   :  { %2650 = vmatprep.subr.bf16.mxu1 %v3315_v50 }
  0x80   :  { %2630 = vmatpush1.bf16.msra.mxu0 %v3480_v44 }
  0x81   :  { %2632 = vmatprep.subr.bf16.mxu0 %v3483_v47 }
  0x82   :  { %2652 = vmatpush3.bf16.msra.mxu1 %v3489_v53 }
  0x83   :  { %2653 = vmatprep.subr.bf16.mxu1 %v3315_v50 }
  0x84   :  { %2634 = vmatpush1.bf16.msra.mxu0 %v3493_v55 }
  0x85   :  { %2636 = vmatprep.subr.bf16.mxu0 %v3496_v58 }
  0x86   :  { %2655 = vmatpush3.bf16.msra.mxu1 %v3508_v1 }
  0x87   :  { %2656 = vmatprep.subr.bf16.mxu1 %v3315_v50 }
  0x88   :  { %2638 = vmatpush1.bf16.msra.mxu0 %v3513_v4 }
  0x89   :  { %2640 = vmatprep.subr.bf16.mxu0 %v3517_v8 }
  0x8a   :  { %2658 = vmatpush3.bf16.msra.mxu1 %v3523_v15 }
  0x8b   :  { %2659 = vmatprep.subr.bf16.mxu1 %v3315_v50 }
  0x8c   :  { %2642 = vmatpush1.bf16.msra.mxu0 %v3528_v20 }
  0x8d   :  { %2644 = vmatprep.subr.bf16.mxu0 %v3532_v23 }
  0x8e   :  { %2661 = vmatpush3.bf16.msra.mxu1 %v3538_v28 }
  0x8f   :  { %2662 = vmatprep.subr.bf16.mxu1 %v3315_v50 }
  0x90   :  { %2646 = vmatpush1.bf16.msra.mxu0 %v3543_v31 }
  0x91   :  { %2672 = vmatprep.subr.bf16.mxu0 %v3451_v14 }
  0x92   :  { %2664 = vmatpush3.bf16.msra.mxu1 %v3551_v36 }
  0x93   :  { %2665 = vmatprep.subr.bf16.mxu1 %v3315_v50 }
  0x96   :  { %2667 = vmatpush3.bf16.msra.mxu1 %v3563_v41 }
  0x97   :  { %2668 = vmatprep.subr.bf16.mxu1 %v3315_v50 }
  0x9a   :  { %2670 = vmatpush3.bf16.msra.mxu1 %v3572_v46 }
  0x9b   :  { %2703 = vmatprep.subr.bf16.mxu1 %v3315_v50 }
 0x130   :  { %v2226_v56 = vpop.f32.mrb[0].mxu1 }
 0x131   :  { %v3614_v57 = vadd.f32 %v2226_v56, %v129_v54  ;;  %v337_v59 = vpop.f32.mrb[1].mxu1 }
 0x134   :  { %v2229_v60 = vpop.f32.mrb[2].mxu1 }
 0x135   :  { %v3616_v62 = vadd.f32 %v2229_v60, %v129_v54  ;;  %v347_v63 = vpop.f32.mrb[3].mxu1  ;;  %v338_v60 = vadd.f32 %v337_v59, %v129_v54  ;;  %v1516_v59 = vsel %vm2049_vm9, 1, %v3314_v13 }
 0x136   :  { %v3618_v2 = vadd.f32 %v347_v63, %v129_v54 }
 0x13c   :  { %v2232_v5 = vpop.f32.mrb[4].mxu1 }
 0x13d   :  { %v3620_v9 = vadd.f32 %v2232_v5, %v129_v54  ;;  %v357_v10 = vpop.f32.mrb[5].mxu1 }
 0x13e   :  { %v3624_v12 = vadd.f32 %v357_v10, %v129_v54 }
 0x144   :  { %v2235_v16 = vpop.f32.mrb[6].mxu1 }
 0x145   :  { %v3628_v22 = vadd.f32 %v2235_v16, %v129_v54  ;;  %v367_v26 = vpop.f32.mrb[7].mxu1  ;;  %v629_v16 = vpop.permute.xlu0 %628 }
 0x146   :  { %v521_v19 = vpop.f32.mrb[0].mxu0  ;;  %v3631_v30 = vadd.f32 %v367_v26, %v129_v54  ;;  %vm630_vm6 = vcmp.eq.s32.totalorder %v629_v16, 1  ;;  %v1160_v54 = vsel %vm2043_vm8, 1, %v3314_v13 }
 0x147   :  { %v3031_v27 = vadd.f32 %v521_v19, %v3622_v11  ;;  %v523_v29 = vpop.f32.mrb[1].mxu0 }
 0x148   :  { %v3032_v34 = vadd.f32 %v523_v29, %v3626_v21 }
 0x149   :  { %v2031_v32 = vmul.f32 -1.442695, %v3031_v27 }
 0x14a   :  { %v2032_v37 = vmul.f32 -1.442695, %v3032_v34  ;;  %v1872_v34 = vsel %vm2055_vm10, 1, %v3314_v13 }
 0x14b   :  { %3082 = vpow2.f32 %v2031_v32 }
 0x14c   :  { %3084 = vpow2.f32 %v2032_v37 }
 0x150   :  { %v592_v39 = vpop.f32.mrb[8].mxu1 }
 0x151   :  { %v2270_v40 = vpop.f32.mrb[9].mxu1  ;;  %v616_v52 = vadd.f32 %v3637_v49, %v592_v39 }
 0x155   :  { %v3083_v43 = vpop.eup %3082 }
 0x156   :  { %v600_v45 = vadd.f32 1.0, %v3083_v43  ;;  %v3085_v48 = vpop.eup %3084 }
 0x157   :  { %v607_v51 = vadd.f32 1.0, %v3085_v48 }
 0x158   :  { %3086 = vrcp.f32 %v600_v45 }
 0x159   :  { %3088 = vrcp.f32 %v607_v51 }
 0x162   :  { %v3087_v56 = vpop.eup %3086 }
 0x163   :  { %v617_v63 = vmul.f32 %v3087_v56, %v616_v52  ;;  %v3089_v5 = vpop.eup %3088 }
 0x164   :  { %v620_v7 = vsub.f32 1.0, %v3089_v5  ;;  %v622_v26 = vmul.f32 %v3089_v5, %v3556_v38 }
 0x165   :  { %v618_v3 = vadd.f32 %v617_v63, %v338_v60 }
 0x167   :  { %3090 = vtanh.f32 %v618_v3 }
 0x171   :  { %v3091_v10 = vpop.eup %3090 }
 0x172   :  { %v621_v19 = vmul.f32 %v3091_v10, %v620_v7 }
 0x174   :  { %v623_v27 = vadd.f32 %v622_v26, %v621_v19  ;;  %v451_v26 = vld [vmem:[#allocation4] sm:$0xff] }
 0x176   :  { %v3641_v29 = vsel %vm630_vm6, %v623_v27, 0.0  ;;  %v3644_v32 = vsel %vm630_vm6, %v623_v27, %v3556_v38  ;;  %v982_v38 = vsel %vm2040_vm7, 1, %v3314_v13 }
 0x177   :  { %703 = vmatmul.mubr.f32.vlgmr.msra.gmra.mrb[2].mxu0 %v3644_v32  ;;  %2304 = vmatmul.mubr.f32.vlgmr.msra.gmra.mrb[10].mxu1 %v3644_v32 }
 0x178   :  { %2674 = vmatpush1.bf16.msra.mxu0 %v3454_v17  ;;  %2705 = vmatpush3.bf16.msra.mxu1 %v3476_v42 }
 0x179   :  { %2676 = vmatprep.subr.bf16.mxu0 %v3457_v18  ;;  %2706 = vmatprep.subr.bf16.mxu1 %v3315_v50 }
 0x17a   :  { %880 = vmatprep.mubr.f32.mxu0 %v3313_v6  ;;  %2338 = vmatprep.mubr.msk.f32.mxu1 %vm3316_vm5, %v3313_v6 }
 0x17b   :  { %984 = vperm.xlu1 %3081, %v982_v38  }
 0x17c   :  { %2678 = vmatpush1.bf16.msra.mxu0 %v3462_v24  ;;  %2708 = vmatpush3.bf16.msra.mxu1 %v3489_v53 }
 0x17d   :  { %2680 = vmatprep.subr.bf16.mxu0 %v3465_v25  ;;  %2709 = vmatprep.subr.bf16.mxu1 %v3315_v50 }
 0x17f   :  { %1162 = vperm.xlu1 %3081, %v1160_v54   ;;  %v807_v54 = vpop.permute.xlu0 %806 }
 0x180   :  { %2682 = vmatpush1.bf16.msra.mxu0 %v3470_v33  ;;  %2711 = vmatpush3.bf16.msra.mxu1 %v3508_v1  ;;  %vm808_vm11 = vcmp.eq.s32.totalorder %v807_v54, 1 }
 0x181   :  { %2684 = vmatprep.subr.bf16.mxu0 %v3473_v35  ;;  %2712 = vmatprep.subr.bf16.mxu1 %v3315_v50 }
 0x183   :  { %1518 = vperm.xlu1 %3081, %v1516_v59  }
 0x184   :  { %2686 = vmatpush1.bf16.msra.mxu0 %v3480_v44  ;;  %2714 = vmatpush3.bf16.msra.mxu1 %v3523_v15 }
 0x185   :  { %2688 = vmatprep.subr.bf16.mxu0 %v3483_v47  ;;  %2715 = vmatprep.subr.bf16.mxu1 %v3315_v50 }
 0x187   :  { %1874 = vperm.xlu1 %3081, %v1872_v34   ;;  %v632_v34 = vadd.f32 %v3641_v29, %v451_v26 }
 0x188   :  { %2690 = vmatpush1.bf16.msra.mxu0 %v3493_v55  ;;  %2717 = vmatpush3.bf16.msra.mxu1 %v3538_v28 }
 0x189   :  { %2692 = vmatprep.subr.bf16.mxu0 %v3496_v58  ;;  %2718 = vmatprep.subr.bf16.mxu1 %v3315_v50 }
 0x18c   :  { %2694 = vmatpush1.bf16.msra.mxu0 %v3513_v4  ;;  %2720 = vmatpush3.bf16.msra.mxu1 %v3551_v36 }
 0x18d   :  { %2696 = vmatprep.subr.bf16.mxu0 %v3517_v8  ;;  %2721 = vmatprep.subr.bf16.mxu1 %v3315_v50 }
 0x190   :  { %2698 = vmatpush1.bf16.msra.mxu0 %v3528_v20  ;;  %2723 = vmatpush3.bf16.msra.mxu1 %v3563_v41 }
 0x191   :  { %2700 = vmatprep.subr.bf16.mxu0 %v3532_v23  ;;  %2724 = vmatprep.subr.bf16.mxu1 %v3315_v50 }
 0x194   :  { %2702 = vmatpush1.bf16.msra.mxu0 %v3543_v31  ;;  %2726 = vmatpush3.bf16.msra.mxu1 %v3572_v46 }
 0x195   :  { %2728 = vmatprep.subr.bf16.mxu0 %v3451_v14  ;;  %2759 = vmatprep.subr.bf16.mxu1 %v3315_v50 }
 0x1fa   :  { %v985_v26 = vpop.permute.xlu1 %984 }
 0x1fb   :  { %vm986_vm12 = vcmp.eq.s32.totalorder %v985_v26, 1 }
 0x24a   :  { %v704_v37 = vpop.f32.mrb[2].mxu0  ;;  %v775_v39 = vpop.f32.mrb[10].mxu1 }
 0x24b   :  { %v3033_v40 = vadd.f32 %v704_v37, %v3622_v11  ;;  %v706_v43 = vpop.f32.mrb[3].mxu0  ;;  %v2305_v45 = vpop.f32.mrb[11].mxu1  ;;  %v793_v13 = vadd.f32 %v3637_v49, %v775_v39 }
 0x24c   :  { %v3034_v51 = vadd.f32 %v706_v43, %v3626_v21 }
 0x24d   :  { %v2035_v48 = vmul.f32 -1.442695, %v3033_v40 }
 0x24e   :  { %v2036_v52 = vmul.f32 -1.442695, %v3034_v51 }
 0x24f   :  { %3092 = vpow2.f32 %v2035_v48 }
 0x250   :  { %3094 = vpow2.f32 %v2036_v52 }
 0x259   :  { %v3093_v56 = vpop.eup %3092 }
 0x25a   :  { %v783_v60 = vadd.f32 1.0, %v3093_v56  ;;  %v3095_v61 = vpop.eup %3094 }
 0x25b   :  { %v790_v63 = vadd.f32 1.0, %v3095_v61 }
 0x25c   :  { %3096 = vrcp.f32 %v783_v60 }
 0x25d   :  { %3098 = vrcp.f32 %v790_v63 }
 0x266   :  { %v3097_v3 = vpop.eup %3096 }
 0x267   :  { %v794_v5 = vmul.f32 %v3097_v3, %v793_v13  ;;  %v3099_v10 = vpop.eup %3098 }
 0x268   :  { %v797_v16 = vsub.f32 1.0, %v3099_v10  ;;  %v799_v38 = vmul.f32 %v3099_v10, %v3644_v32 }
 0x269   :  { %v795_v7 = vadd.f32 %v794_v5, %v3614_v57 }
 0x26b   :  { %3100 = vtanh.f32 %v795_v7 }
 0x275   :  { %v3101_v19 = vpop.eup %3100 }
 0x276   :  { %v798_v27 = vmul.f32 %v3101_v19, %v797_v16 }
 0x278   :  { %v800_v59 = vadd.f32 %v799_v38, %v798_v27 }
 0x27a   :  { %v3698_v37 = vsel %vm808_vm11, %v800_v59, %v3644_v32  ;;  %v809_v39 = vsel %vm808_vm11, %v800_v59, 0.0 }
 0x27b   :  { %881 = vmatmul.mubr.f32.vlgmr.msra.gmra.mrb[4].mxu0 %v3698_v37  ;;  %2339 = vmatmul.mubr.f32.vlgmr.msra.gmra.mrb[12].mxu1 %v3698_v37  ;;  %v3702_v57 = vadd.f32 %v809_v39, %v632_v34 }
 0x27c   :  { %2730 = vmatpush1.bf16.msra.mxu0 %v3454_v17  ;;  %2761 = vmatpush3.bf16.msra.mxu1 %v3476_v42 }
 0x27d   :  { %2732 = vmatprep.subr.bf16.mxu0 %v3457_v18  ;;  %2762 = vmatprep.subr.bf16.mxu1 %v3315_v50 }
 0x27e   :  { %1058 = vmatprep.mubr.f32.mxu0 %v3313_v6  ;;  %2373 = vmatprep.mubr.msk.f32.mxu1 %vm3316_vm5, %v3313_v6 }
 0x280   :  { %2734 = vmatpush1.bf16.msra.mxu0 %v3462_v24  ;;  %2764 = vmatpush3.bf16.msra.mxu1 %v3489_v53 }
 0x281   :  { %2736 = vmatprep.subr.bf16.mxu0 %v3465_v25  ;;  %2765 = vmatprep.subr.bf16.mxu1 %v3315_v50 }
 0x284   :  { %2738 = vmatpush1.bf16.msra.mxu0 %v3470_v33  ;;  %2767 = vmatpush3.bf16.msra.mxu1 %v3508_v1 }
 0x285   :  { %2740 = vmatprep.subr.bf16.mxu0 %v3473_v35  ;;  %2768 = vmatprep.subr.bf16.mxu1 %v3315_v50 }
 0x288   :  { %2742 = vmatpush1.bf16.msra.mxu0 %v3480_v44  ;;  %2770 = vmatpush3.bf16.msra.mxu1 %v3523_v15 }
 0x289   :  { %2744 = vmatprep.subr.bf16.mxu0 %v3483_v47  ;;  %2771 = vmatprep.subr.bf16.mxu1 %v3315_v50 }
 0x28c   :  { %2746 = vmatpush1.bf16.msra.mxu0 %v3493_v55  ;;  %2773 = vmatpush3.bf16.msra.mxu1 %v3538_v28 }
 0x28d   :  { %2748 = vmatprep.subr.bf16.mxu0 %v3496_v58  ;;  %2774 = vmatprep.subr.bf16.mxu1 %v3315_v50 }
 0x290   :  { %2750 = vmatpush1.bf16.msra.mxu0 %v3513_v4  ;;  %2776 = vmatpush3.bf16.msra.mxu1 %v3551_v36 }
 0x291   :  { %2752 = vmatprep.subr.bf16.mxu0 %v3517_v8  ;;  %2777 = vmatprep.subr.bf16.mxu1 %v3315_v50 }
 0x294   :  { %2754 = vmatpush1.bf16.msra.mxu0 %v3528_v20  ;;  %2779 = vmatpush3.bf16.msra.mxu1 %v3563_v41 }
 0x295   :  { %2756 = vmatprep.subr.bf16.mxu0 %v3532_v23  ;;  %2780 = vmatprep.subr.bf16.mxu1 %v3315_v50 }
 0x298   :  { %2758 = vmatpush1.bf16.msra.mxu0 %v3543_v31  ;;  %2782 = vmatpush3.bf16.msra.mxu1 %v3572_v46 }
 0x299   :  { %2784 = vmatprep.subr.bf16.mxu0 %v3451_v14  ;;  %2815 = vmatprep.subr.bf16.mxu1 %v3315_v50 }
 0x34e   :  { %v882_v29 = vpop.f32.mrb[4].mxu0  ;;  %v953_v32 = vpop.f32.mrb[12].mxu1 }
 0x34f   :  { %v3035_v40 = vadd.f32 %v882_v29, %v3622_v11  ;;  %v884_v43 = vpop.f32.mrb[5].mxu0  ;;  %v2340_v45 = vpop.f32.mrb[13].mxu1  ;;  %v971_v13 = vadd.f32 %v3637_v49, %v953_v32 }
 0x350   :  { %v3036_v51 = vadd.f32 %v884_v43, %v3626_v21 }
 0x351   :  { %v2038_v48 = vmul.f32 -1.442695, %v3035_v40 }
 0x352   :  { %v2039_v52 = vmul.f32 -1.442695, %v3036_v51 }
 0x353   :  { %3102 = vpow2.f32 %v2038_v48 }
 0x354   :  { %3104 = vpow2.f32 %v2039_v52 }
 0x35d   :  { %v3103_v56 = vpop.eup %3102 }
 0x35e   :  { %v961_v60 = vadd.f32 1.0, %v3103_v56  ;;  %v3105_v61 = vpop.eup %3104 }
 0x35f   :  { %v968_v63 = vadd.f32 1.0, %v3105_v61 }
 0x360   :  { %3106 = vrcp.f32 %v961_v60 }
 0x361   :  { %3108 = vrcp.f32 %v968_v63 }
 0x36a   :  { %v3107_v3 = vpop.eup %3106 }
 0x36b   :  { %v972_v5 = vmul.f32 %v3107_v3, %v971_v13  ;;  %v3109_v10 = vpop.eup %3108 }
 0x36c   :  { %v975_v16 = vsub.f32 1.0, %v3109_v10  ;;  %v977_v38 = vmul.f32 %v3109_v10, %v3698_v37 }
 0x36d   :  { %v973_v7 = vadd.f32 %v972_v5, %v3618_v2 }
 0x36f   :  { %3110 = vtanh.f32 %v973_v7 }
 0x379   :  { %v3111_v19 = vpop.eup %3110 }
 0x37a   :  { %v976_v27 = vmul.f32 %v3111_v19, %v975_v16  ;;  %v1163_v19 = vpop.permute.xlu1 %1162 }
 0x37b   :  { %vm1164_vm13 = vcmp.eq.s32.totalorder %v1163_v19, 1 }
 0x37c   :  { %v978_v54 = vadd.f32 %v977_v38, %v976_v27 }
 0x37e   :  { %v987_v59 = vsel %vm986_vm12, %v978_v54, 0.0  ;;  %v3745_v34 = vsel %vm986_vm12, %v978_v54, %v3698_v37 }
 0x37f   :  { %v3748_v39 = vadd.f32 %v987_v59, %v3702_v57  ;;  %1059 = vmatmul.mubr.f32.vlgmr.msra.gmra.mrb[6].mxu0 %v3745_v34  ;;  %2374 = vmatmul.mubr.f32.vlgmr.msra.gmra.mrb[14].mxu1 %v3745_v34 }
 0x380   :  { %2786 = vmatpush1.bf16.msra.mxu0 %v3454_v17  ;;  %2817 = vmatpush3.bf16.msra.mxu1 %v3476_v42 }
 0x381   :  { %2788 = vmatprep.subr.bf16.mxu0 %v3457_v18  ;;  %2818 = vmatprep.subr.bf16.mxu1 %v3315_v50 }
 0x382   :  { %1236 = vmatprep.mubr.f32.mxu0 %v3313_v6  ;;  %2408 = vmatprep.mubr.msk.f32.mxu1 %vm3316_vm5, %v3313_v6 }
 0x384   :  { %2790 = vmatpush1.bf16.msra.mxu0 %v3462_v24  ;;  %2820 = vmatpush3.bf16.msra.mxu1 %v3489_v53 }
 0x385   :  { %2792 = vmatprep.subr.bf16.mxu0 %v3465_v25  ;;  %2821 = vmatprep.subr.bf16.mxu1 %v3315_v50 }
 0x388   :  { %2794 = vmatpush1.bf16.msra.mxu0 %v3470_v33  ;;  %2823 = vmatpush3.bf16.msra.mxu1 %v3508_v1 }
 0x389   :  { %2796 = vmatprep.subr.bf16.mxu0 %v3473_v35  ;;  %2824 = vmatprep.subr.bf16.mxu1 %v3315_v50 }
 0x38c   :  { %2798 = vmatpush1.bf16.msra.mxu0 %v3480_v44  ;;  %2826 = vmatpush3.bf16.msra.mxu1 %v3523_v15 }
 0x38d   :  { %2800 = vmatprep.subr.bf16.mxu0 %v3483_v47  ;;  %2827 = vmatprep.subr.bf16.mxu1 %v3315_v50 }
 0x390   :  { %2802 = vmatpush1.bf16.msra.mxu0 %v3493_v55  ;;  %2829 = vmatpush3.bf16.msra.mxu1 %v3538_v28 }
 0x391   :  { %2804 = vmatprep.subr.bf16.mxu0 %v3496_v58  ;;  %2830 = vmatprep.subr.bf16.mxu1 %v3315_v50 }
 0x394   :  { %2806 = vmatpush1.bf16.msra.mxu0 %v3513_v4  ;;  %2832 = vmatpush3.bf16.msra.mxu1 %v3551_v36 }
 0x395   :  { %2808 = vmatprep.subr.bf16.mxu0 %v3517_v8  ;;  %2833 = vmatprep.subr.bf16.mxu1 %v3315_v50 }
 0x398   :  { %2810 = vmatpush1.bf16.msra.mxu0 %v3528_v20  ;;  %2835 = vmatpush3.bf16.msra.mxu1 %v3563_v41 }
 0x399   :  { %2812 = vmatprep.subr.bf16.mxu0 %v3532_v23  ;;  %2836 = vmatprep.subr.bf16.mxu1 %v3315_v50 }
 0x39c   :  { %2814 = vmatpush1.bf16.msra.mxu0 %v3543_v31  ;;  %2838 = vmatpush3.bf16.msra.mxu1 %v3572_v46 }
 0x39d   :  { %2840 = vmatprep.subr.bf16.mxu0 %v3451_v14  ;;  %2871 = vmatprep.subr.bf16.mxu1 %v3315_v50 }
 0x452   :  { %v1060_v2 = vpop.f32.mrb[6].mxu0  ;;  %v1131_v37 = vpop.f32.mrb[14].mxu1 }
 0x453   :  { %v3037_v57 = vadd.f32 %v1060_v2, %v3622_v11  ;;  %v1062_v29 = vpop.f32.mrb[7].mxu0  ;;  %v2375_v32 = vpop.f32.mrb[15].mxu1  ;;  %v1149_v60 = vadd.f32 %v3637_v49, %v1131_v37 }
 0x454   :  { %v3038_v43 = vadd.f32 %v1062_v29, %v3626_v21 }
 0x455   :  { %v2041_v40 = vmul.f32 -1.442695, %v3037_v57 }
 0x456   :  { %v2042_v45 = vmul.f32 -1.442695, %v3038_v43 }
 0x457   :  { %3112 = vpow2.f32 %v2041_v40 }
 0x458   :  { %3114 = vpow2.f32 %v2042_v45 }
 0x461   :  { %v3113_v48 = vpop.eup %3112 }
 0x462   :  { %v1139_v51 = vadd.f32 1.0, %v3113_v48  ;;  %v3115_v52 = vpop.eup %3114 }
 0x463   :  { %v1146_v56 = vadd.f32 1.0, %v3115_v52 }
 0x464   :  { %3116 = vrcp.f32 %v1139_v51 }
 0x465   :  { %3118 = vrcp.f32 %v1146_v56 }
 0x46e   :  { %v3117_v61 = vpop.eup %3116 }
 0x46f   :  { %v1150_v63 = vmul.f32 %v3117_v61, %v1149_v60  ;;  %v3119_v3 = vpop.eup %3118 }
 0x470   :  { %v1153_v5 = vsub.f32 1.0, %v3119_v3  ;;  %v1155_v16 = vmul.f32 %v3119_v3, %v3745_v34 }
 0x471   :  { %v1151_v13 = vadd.f32 %v1150_v63, %v3616_v62 }
 0x473   :  { %3120 = vtanh.f32 %v1151_v13 }
 0x47d   :  { %v3121_v7 = vpop.eup %3120 }
 0x47e   :  { %v1154_v10 = vmul.f32 %v3121_v7, %v1153_v5  ;;  %v1341_v5 = vpop.permute.xlu0 %1340 }
 0x47f   :  { %vm1342_vm14 = vcmp.eq.s32.totalorder %v1341_v5, 1 }
 0x480   :  { %v1156_v26 = vadd.f32 %v1155_v16, %v1154_v10 }
 0x482   :  { %v1165_v27 = vsel %vm1164_vm13, %v1156_v26, 0.0  ;;  %v3793_v38 = vsel %vm1164_vm13, %v1156_v26, %v3745_v34 }
 0x483   :  { %v3796_v54 = vadd.f32 %v1165_v27, %v3748_v39  ;;  %1237 = vmatmul.mubr.f32.vlgmr.msra.gmra.mrb[8].mxu0 %v3793_v38  ;;  %2409 = vmatmul.mubr.f32.vlgmr.msra.gmra.mrb[16].mxu1 %v3793_v38 }
 0x484   :  { %2842 = vmatpush1.bf16.msra.mxu0 %v3454_v17  ;;  %2873 = vmatpush3.bf16.msra.mxu1 %v3476_v42 }
 0x485   :  { %2844 = vmatprep.subr.bf16.mxu0 %v3457_v18  ;;  %2874 = vmatprep.subr.bf16.mxu1 %v3315_v50 }
 0x486   :  { %1414 = vmatprep.mubr.f32.mxu0 %v3313_v6  ;;  %2443 = vmatprep.mubr.msk.f32.mxu1 %vm3316_vm5, %v3313_v6 }
 0x488   :  { %2846 = vmatpush1.bf16.msra.mxu0 %v3462_v24  ;;  %2876 = vmatpush3.bf16.msra.mxu1 %v3489_v53 }
 0x489   :  { %2848 = vmatprep.subr.bf16.mxu0 %v3465_v25  ;;  %2877 = vmatprep.subr.bf16.mxu1 %v3315_v50 }
 0x48c   :  { %2850 = vmatpush1.bf16.msra.mxu0 %v3470_v33  ;;  %2879 = vmatpush3.bf16.msra.mxu1 %v3508_v1 }
 0x48d   :  { %2852 = vmatprep.subr.bf16.mxu0 %v3473_v35  ;;  %2880 = vmatprep.subr.bf16.mxu1 %v3315_v50 }
 0x490   :  { %2854 = vmatpush1.bf16.msra.mxu0 %v3480_v44  ;;  %2882 = vmatpush3.bf16.msra.mxu1 %v3523_v15 }
 0x491   :  { %2856 = vmatprep.subr.bf16.mxu0 %v3483_v47  ;;  %2883 = vmatprep.subr.bf16.mxu1 %v3315_v50 }
 0x494   :  { %2858 = vmatpush1.bf16.msra.mxu0 %v3493_v55  ;;  %2885 = vmatpush3.bf16.msra.mxu1 %v3538_v28 }
 0x495   :  { %2860 = vmatprep.subr.bf16.mxu0 %v3496_v58  ;;  %2886 = vmatprep.subr.bf16.mxu1 %v3315_v50 }
 0x498   :  { %2862 = vmatpush1.bf16.msra.mxu0 %v3513_v4  ;;  %2888 = vmatpush3.bf16.msra.mxu1 %v3551_v36 }
 0x499   :  { %2864 = vmatprep.subr.bf16.mxu0 %v3517_v8  ;;  %2889 = vmatprep.subr.bf16.mxu1 %v3315_v50 }
 0x49c   :  { %2866 = vmatpush1.bf16.msra.mxu0 %v3528_v20  ;;  %2891 = vmatpush3.bf16.msra.mxu1 %v3563_v41 }
 0x49d   :  { %2868 = vmatprep.subr.bf16.mxu0 %v3532_v23  ;;  %2892 = vmatprep.subr.bf16.mxu1 %v3315_v50 }
 0x4a0   :  { %2870 = vmatpush1.bf16.msra.mxu0 %v3543_v31  ;;  %2894 = vmatpush3.bf16.msra.mxu1 %v3572_v46 }
 0x4a1   :  { %2896 = vmatprep.subr.bf16.mxu0 %v3451_v14  ;;  %2927 = vmatprep.subr.bf16.mxu1 %v3315_v50 }
 0x556   :  { %v1238_v62 = vpop.f32.mrb[8].mxu0  ;;  %v1309_v59 = vpop.f32.mrb[16].mxu1 }
 0x557   :  { %v3039_v34 = vadd.f32 %v1238_v62, %v3622_v11  ;;  %v1240_v39 = vpop.f32.mrb[9].mxu0  ;;  %v2410_v2 = vpop.f32.mrb[17].mxu1  ;;  %v1327_v48 = vadd.f32 %v3637_v49, %v1309_v59 }
 0x558   :  { %v3040_v57 = vadd.f32 %v1240_v39, %v3626_v21 }
 0x559   :  { %v2044_v37 = vmul.f32 -1.442695, %v3039_v34 }
 0x55a   :  { %v2045_v29 = vmul.f32 -1.442695, %v3040_v57 }
 0x55b   :  { %3122 = vpow2.f32 %v2044_v37 }
 0x55c   :  { %3124 = vpow2.f32 %v2045_v29 }
 0x565   :  { %v3123_v32 = vpop.eup %3122 }
 0x566   :  { %v1317_v40 = vadd.f32 1.0, %v3123_v32  ;;  %v3125_v43 = vpop.eup %3124 }
 0x567   :  { %v1324_v45 = vadd.f32 1.0, %v3125_v43 }
 0x568   :  { %3126 = vrcp.f32 %v1317_v40 }
 0x569   :  { %3128 = vrcp.f32 %v1324_v45 }
 0x572   :  { %v3127_v51 = vpop.eup %3126 }
 0x573   :  { %v1328_v52 = vmul.f32 %v3127_v51, %v1327_v48  ;;  %v3129_v60 = vpop.eup %3128 }
 0x574   :  { %v1331_v61 = vsub.f32 1.0, %v3129_v60  ;;  %v1333_v3 = vmul.f32 %v3129_v60, %v3793_v38 }
 0x575   :  { %v1329_v56 = vadd.f32 %v1328_v52, %v3624_v12 }
 0x577   :  { %3130 = vtanh.f32 %v1329_v56  ;;  %v1519_v56 = vpop.permute.xlu1 %1518 }
 0x578   :  { %vm1520_vm15 = vcmp.eq.s32.totalorder %v1519_v56, 1 }
 0x581   :  { %v3131_v63 = vpop.eup %3130 }
 0x582   :  { %v1332_v13 = vmul.f32 %v3131_v63, %v1331_v61 }
 0x584   :  { %v1334_v7 = vadd.f32 %v1333_v3, %v1332_v13 }
 0x586   :  { %v1343_v10 = vsel %vm1342_vm14, %v1334_v7, 0.0  ;;  %v3841_v16 = vsel %vm1342_vm14, %v1334_v7, %v3793_v38 }
 0x587   :  { %v3844_v19 = vadd.f32 %v1343_v10, %v3796_v54  ;;  %1415 = vmatmul.mubr.f32.vlgmr.msra.gmra.mrb[10].mxu0 %v3841_v16  ;;  %2444 = vmatmul.mubr.f32.vlgmr.msra.gmra.mrb[18].mxu1 %v3841_v16 }
 0x588   :  { %2898 = vmatpush1.bf16.msra.mxu0 %v3454_v17  ;;  %2929 = vmatpush3.bf16.msra.mxu1 %v3476_v42 }
 0x589   :  { %2900 = vmatprep.subr.bf16.mxu0 %v3457_v18  ;;  %2930 = vmatprep.subr.bf16.mxu1 %v3315_v50 }
 0x58a   :  { %1592 = vmatprep.mubr.f32.mxu0 %v3313_v6  ;;  %2478 = vmatprep.mubr.msk.f32.mxu1 %vm3316_vm5, %v3313_v6 }
 0x58c   :  { %2902 = vmatpush1.bf16.msra.mxu0 %v3462_v24  ;;  %2932 = vmatpush3.bf16.msra.mxu1 %v3489_v53 }
 0x58d   :  { %2904 = vmatprep.subr.bf16.mxu0 %v3465_v25  ;;  %2933 = vmatprep.subr.bf16.mxu1 %v3315_v50 }
 0x590   :  { %2906 = vmatpush1.bf16.msra.mxu0 %v3470_v33  ;;  %2935 = vmatpush3.bf16.msra.mxu1 %v3508_v1 }
 0x591   :  { %2908 = vmatprep.subr.bf16.mxu0 %v3473_v35  ;;  %2936 = vmatprep.subr.bf16.mxu1 %v3315_v50 }
 0x594   :  { %2910 = vmatpush1.bf16.msra.mxu0 %v3480_v44  ;;  %2938 = vmatpush3.bf16.msra.mxu1 %v3523_v15 }
 0x595   :  { %2912 = vmatprep.subr.bf16.mxu0 %v3483_v47  ;;  %2939 = vmatprep.subr.bf16.mxu1 %v3315_v50 }
 0x598   :  { %2914 = vmatpush1.bf16.msra.mxu0 %v3493_v55  ;;  %2941 = vmatpush3.bf16.msra.mxu1 %v3538_v28 }
 0x599   :  { %2916 = vmatprep.subr.bf16.mxu0 %v3496_v58  ;;  %2942 = vmatprep.subr.bf16.mxu1 %v3315_v50 }
 0x59c   :  { %2918 = vmatpush1.bf16.msra.mxu0 %v3513_v4  ;;  %2944 = vmatpush3.bf16.msra.mxu1 %v3551_v36 }
 0x59d   :  { %2920 = vmatprep.subr.bf16.mxu0 %v3517_v8  ;;  %2945 = vmatprep.subr.bf16.mxu1 %v3315_v50 }
 0x5a0   :  { %2922 = vmatpush1.bf16.msra.mxu0 %v3528_v20  ;;  %2947 = vmatpush3.bf16.msra.mxu1 %v3563_v41 }
 0x5a1   :  { %2924 = vmatprep.subr.bf16.mxu0 %v3532_v23  ;;  %2948 = vmatprep.subr.bf16.mxu1 %v3315_v50 }
 0x5a4   :  { %2926 = vmatpush1.bf16.msra.mxu0 %v3543_v31  ;;  %2950 = vmatpush3.bf16.msra.mxu1 %v3572_v46 }
 0x5a5   :  { %2952 = vmatprep.subr.bf16.mxu0 %v3451_v14  ;;  %2983 = vmatprep.subr.bf16.mxu1 %v3315_v50 }
 0x65a   :  { %v1416_v12 = vpop.f32.mrb[10].mxu0  ;;  %v1487_v26 = vpop.f32.mrb[18].mxu1 }
 0x65b   :  { %v3041_v27 = vadd.f32 %v1416_v12, %v3622_v11  ;;  %v1418_v38 = vpop.f32.mrb[11].mxu0  ;;  %v2445_v54 = vpop.f32.mrb[19].mxu1  ;;  %v1505_v14 = vadd.f32 %v3637_v49, %v1487_v26 }
 0x65c   :  { %v3042_v59 = vadd.f32 %v1418_v38, %v3626_v21 }
 0x65d   :  { %v2047_v62 = vmul.f32 -1.442695, %v3041_v27 }
 0x65e   :  { %v2048_v34 = vmul.f32 -1.442695, %v3042_v59 }
 0x65f   :  { %3132 = vpow2.f32 %v2047_v62 }
 0x660   :  { %3134 = vpow2.f32 %v2048_v34 }
 0x669   :  { %v3133_v39 = vpop.eup %3132 }
 0x66a   :  { %v1495_v2 = vadd.f32 1.0, %v3133_v39  ;;  %v3135_v37 = vpop.eup %3134 }
 0x66b   :  { %v1502_v57 = vadd.f32 1.0, %v3135_v37 }
 0x66c   :  { %3136 = vrcp.f32 %v1495_v2 }
 0x66d   :  { %3138 = vrcp.f32 %v1502_v57 }
 0x676   :  { %v3137_v29 = vpop.eup %3136 }
 0x677   :  { %v1506_v32 = vmul.f32 %v3137_v29, %v1505_v14  ;;  %v3139_v43 = vpop.eup %3138 }
 0x678   :  { %v1509_v45 = vsub.f32 1.0, %v3139_v43  ;;  %v1511_v52 = vmul.f32 %v3139_v43, %v3841_v16 }
 0x679   :  { %v1507_v40 = vadd.f32 %v1506_v32, %v3620_v9 }
 0x67b   :  { %3140 = vtanh.f32 %v1507_v40 }
 0x685   :  { %v3141_v48 = vpop.eup %3140 }
 0x686   :  { %v1510_v51 = vmul.f32 %v3141_v48, %v1509_v45 }
 0x688   :  { %v1512_v60 = vadd.f32 %v1511_v52, %v1510_v51 }
 0x68a   :  { %v1521_v61 = vsel %vm1520_vm15, %v1512_v60, 0.0  ;;  %v3889_v63 = vsel %vm1520_vm15, %v1512_v60, %v3841_v16 }
 0x68b   :  { %v3892_v13 = vadd.f32 %v1521_v61, %v3844_v19  ;;  %1593 = vmatmul.mubr.f32.vlgmr.msra.gmra.mrb[12].mxu0 %v3889_v63  ;;  %2479 = vmatmul.mubr.f32.vlgmr.msra.gmra.mrb[20].mxu1 %v3889_v63 }
 0x68c   :  { %2954 = vmatpush1.bf16.msra.mxu0 %v3454_v17  ;;  %2985 = vmatpush3.bf16.msra.mxu1 %v3476_v42 }
 0x68d   :  { %2956 = vmatprep.subr.bf16.mxu0 %v3457_v18  ;;  %2986 = vmatprep.subr.bf16.mxu1 %v3315_v50 }
 0x68e   :  { %1770 = vmatprep.mubr.f32.mxu0 %v3313_v6  ;;  %2513 = vmatprep.mubr.msk.f32.mxu1 %vm3316_vm5, %v3313_v6 }
 0x690   :  { %2958 = vmatpush1.bf16.msra.mxu0 %v3462_v24  ;;  %2988 = vmatpush3.bf16.msra.mxu1 %v3489_v53 }
 0x691   :  { %2960 = vmatprep.subr.bf16.mxu0 %v3465_v25  ;;  %2989 = vmatprep.subr.bf16.mxu1 %v3315_v50 }
 0x694   :  { %2962 = vmatpush1.bf16.msra.mxu0 %v3470_v33  ;;  %2991 = vmatpush3.bf16.msra.mxu1 %v3508_v1 }
 0x695   :  { %2964 = vmatprep.subr.bf16.mxu0 %v3473_v35  ;;  %2992 = vmatprep.subr.bf16.mxu1 %v3315_v50 }
 0x698   :  { %2966 = vmatpush1.bf16.msra.mxu0 %v3480_v44  ;;  %2994 = vmatpush3.bf16.msra.mxu1 %v3523_v15 }
 0x699   :  { %2968 = vmatprep.subr.bf16.mxu0 %v3483_v47  ;;  %2995 = vmatprep.subr.bf16.mxu1 %v3315_v50 }
 0x69c   :  { %2970 = vmatpush1.bf16.msra.mxu0 %v3493_v55  ;;  %2997 = vmatpush3.bf16.msra.mxu1 %v3538_v28 }
 0x69d   :  { %2972 = vmatprep.subr.bf16.mxu0 %v3496_v58  ;;  %2998 = vmatprep.subr.bf16.mxu1 %v3315_v50 }
 0x6a0   :  { %2974 = vmatpush1.bf16.msra.mxu0 %v3513_v4  ;;  %3000 = vmatpush3.bf16.msra.mxu1 %v3551_v36 }
 0x6a1   :  { %2976 = vmatprep.subr.bf16.mxu0 %v3517_v8  ;;  %3001 = vmatprep.subr.bf16.mxu1 %v3315_v50 }
 0x6a4   :  { %2978 = vmatpush1.bf16.msra.mxu0 %v3528_v20  ;;  %3003 = vmatpush3.bf16.msra.mxu1 %v3563_v41 }
 0x6a5   :  { %2980 = vmatprep.subr.bf16.mxu0 %v3532_v23  ;;  %3004 = vmatprep.subr.bf16.mxu1 %v3315_v50  ;;  %v1697_v23 = vpop.permute.xlu0 %1696 }
 0x6a6   :  { %vm1698_vm0 = vcmp.eq.s32.totalorder %v1697_v23, 1 }
 0x6a8   :  { %2982 = vmatpush1.bf16.msra.mxu0 %v3543_v31  ;;  %3006 = vmatpush3.bf16.msra.mxu1 %v3572_v46 }
 0x75e   :  { %v1594_v6 = vpop.f32.mrb[12].mxu0  ;;  %v1665_v17 = vpop.f32.mrb[20].mxu1 }
 0x75f   :  { %v3043_v18 = vadd.f32 %v1594_v6, %v3622_v11  ;;  %v1596_v24 = vpop.f32.mrb[13].mxu0  ;;  %v2480_v25 = vpop.f32.mrb[21].mxu1  ;;  %v1683_v55 = vadd.f32 %v3637_v49, %v1665_v17 }
 0x760   :  { %v3044_v35 = vadd.f32 %v1596_v24, %v3626_v21 }
 0x761   :  { %v2050_v33 = vmul.f32 -1.442695, %v3043_v18 }
 0x762   :  { %v2051_v42 = vmul.f32 -1.442695, %v3044_v35 }
 0x763   :  { %3142 = vpow2.f32 %v2050_v33 }
 0x764   :  { %3144 = vpow2.f32 %v2051_v42 }
 0x76d   :  { %v3143_v44 = vpop.eup %3142 }
 0x76e   :  { %v1673_v47 = vadd.f32 1.0, %v3143_v44  ;;  %v3145_v50 = vpop.eup %3144 }
 0x76f   :  { %v1680_v53 = vadd.f32 1.0, %v3145_v50 }
 0x770   :  { %3146 = vrcp.f32 %v1673_v47 }
 0x771   :  { %3148 = vrcp.f32 %v1680_v53 }
 0x77a   :  { %v3147_v58 = vpop.eup %3146 }
 0x77b   :  { %v1684_v1 = vmul.f32 %v3147_v58, %v1683_v55  ;;  %v3149_v8 = vpop.eup %3148 }
 0x77c   :  { %v1687_v15 = vsub.f32 1.0, %v3149_v8  ;;  %v1689_v31 = vmul.f32 %v3149_v8, %v3889_v63 }
 0x77d   :  { %v1685_v4 = vadd.f32 %v1684_v1, %v3631_v30 }
 0x77f   :  { %3150 = vtanh.f32 %v1685_v4 }
 0x789   :  { %v3151_v20 = vpop.eup %3150 }
 0x78a   :  { %v1688_v28 = vmul.f32 %v3151_v20, %v1687_v15 }
 0x78c   :  { %v1690_v36 = vadd.f32 %v1689_v31, %v1688_v28 }
 0x78e   :  { %v1699_v41 = vsel %vm1698_vm0, %v1690_v36, 0.0  ;;  %v1701_v46 = vsel %vm1698_vm0, %v1690_v36, %v3889_v63 }
 0x78f   :  { %v1700_v9 = vadd.f32 %v1699_v41, %v3892_v13  ;;  %1771 = vmatmul.mubr.f32.vlgmr.msra.gmra.mrb[14].mxu0 %v1701_v46  ;;  %2514 = vmatmul.mubr.f32.vlgmr.msra.gmra.mrb[22].mxu1 %v1701_v46 }
 0x862   :  { %v1772_v3 = vpop.f32.mrb[14].mxu0  ;;  %v1843_v5 = vpop.f32.mrb[22].mxu1 }
 0x863   :  { %v3045_v30 = vadd.f32 %v1772_v3, %v3622_v11  ;;  %v1774_v7 = vpop.f32.mrb[15].mxu0  ;;  %v2515_v10 = vpop.f32.mrb[23].mxu1  ;;  %v1861_v62 = vadd.f32 %v3637_v49, %v1843_v5 }
 0x864   :  { %v3046_v19 = vadd.f32 %v1774_v7, %v3626_v21  ;;  %v1875_v21 = vpop.permute.xlu1 %1874 }
 0x865   :  { %v2053_v16 = vmul.f32 -1.442695, %v3045_v30  ;;  %vm1876_vm1 = vcmp.eq.s32.totalorder %v1875_v21, 1 }
 0x866   :  { %v2054_v12 = vmul.f32 -1.442695, %v3046_v19 }
 0x867   :  { %3152 = vpow2.f32 %v2053_v16 }
 0x868   :  { %3154 = vpow2.f32 %v2054_v12 }
 0x871   :  { %v3153_v26 = vpop.eup %3152 }
 0x872   :  { %v1851_v27 = vadd.f32 1.0, %v3153_v26  ;;  %v3155_v38 = vpop.eup %3154 }
 0x873   :  { %v1858_v54 = vadd.f32 1.0, %v3155_v38 }
 0x874   :  { %3156 = vrcp.f32 %v1851_v27 }
 0x875   :  { %3158 = vrcp.f32 %v1858_v54 }
 0x87e   :  { %v3157_v59 = vpop.eup %3156 }
 0x87f   :  { %v1862_v34 = vmul.f32 %v3157_v59, %v1861_v62  ;;  %v3159_v39 = vpop.eup %3158 }
 0x880   :  { %v1865_v2 = vsub.f32 1.0, %v3159_v39  ;;  %v1867_v14 = vmul.f32 %v3159_v39, %v1701_v46 }
 0x881   :  { %v1863_v11 = vadd.f32 %v1862_v34, %v3628_v22 }
 0x883   :  { %3160 = vtanh.f32 %v1863_v11 }
 0x88d   :  { %v3161_v37 = vpop.eup %3160 }
 0x88e   :  { %v1866_v57 = vmul.f32 %v3161_v37, %v1865_v2 }
 0x890   :  { %v1868_v29 = vadd.f32 %v1867_v14, %v1866_v57 }
 0x892   :  { %v1877_v32 = vsel %vm1876_vm1, %v1868_v29, 0.0  ;;  %v1879_v40 = vsel %vm1876_vm1, %v1868_v29, %v1701_v46 }
 0x893   :  { %v1878_v43 = vadd.f32 %v1877_v32, %v1700_v9  ;;  %1880 = vst [vmem:[#allocation3] sm:$0xff] %v1879_v40 }
 0x895   :  { %1881 = vst [vmem:[#allocation4] sm:$0xff] %v1878_v43 }
 0x896 PF:  { %v1888_v49 = vld [vmem:[#allocation13] sm:$0xff]  ;;  %v1889_v45 = vld [vmem:[#allocation13 + $0x8] sm:$0xff]  ;;  %v1890_v48 = vld [vmem:[#allocation13 + $0x10] sm:$0xff]  ;;  %v3317_v51 = vmov 0.0|0.0   ;;  %vm3318_vm2 = vmmov 0   ;;  %s3319_s6 = smov [#allocation15]  }
 0x897   :  { %3007 = vmatprep.subr.bf16.mxu0 %v3317_v51  ;;  %v3008_v22 = vpack.c.bf16 %v1889_v45, %v1888_v49  ;;  %v1891_v52 = vld [vmem:[#allocation13 + $0x18] sm:$0xff]  ;;  %2548 = vmatprep.mubr.msk.f32.mxu0 %vm3318_vm2, %v3312_v0  ;;  %v1892_v60 = vld [vmem:[#allocation13 + $0x20] sm:$0xff]  ;;  %v1893_v61 = vld [vmem:[#allocation13 + $0x28] sm:$0xff]  ;;  %s1988_s25 = sshll.u32 %s3319_s6, 4  ;;  %s1989_s25 = int_to_ptr.vmem [resolvable:$true] %s1988_s25 }
 0x898   :  { %v3011_v56 = vpack.c.bf16 %v1891_v52, %v1890_v48  ;;  %v3014_v6 = vpack.c.bf16 %v1893_v61, %v1892_v60  ;;  %v1894_v17 = vld [vmem:[#allocation13 + $0x30] sm:$0xff]  ;;  %v1895_v18 = vld [vmem:[#allocation13 + $0x38] sm:$0xff]  ;;  %v1896_v25 = vld [vmem:[#allocation13 + $0x40] sm:$0xff]  ;;  %s3250_s29 = scalar_lea.vmem %s1989_s25, 128  ;;  %p3255_p6 = scmp.lt.s32.totalorder %s1989_s25, %s1989_s25 }
 0x899   :  { %3009 = vmatpush3.bf16.msra.mxu0 %v3008_v22  ;;  %v3017_v24 = vpack.c.bf16 %v1895_v18, %v1894_v17  ;;  %v1897_v33 = vld [vmem:[#allocation13 + $0x48] sm:$0xff]  ;;  %v1898_v35 = vld [vmem:[#allocation13 + $0x50] sm:$0xff]  ;;  %v1899_v42 = vld [vmem:[#allocation13 + $0x58] sm:$0xff]  ;;  %p3251_p5 = scmp.ne.s32.totalorder %s1989_s25, %s3250_s29  ;;  %p3256_p7 = scmp.lt.s32.totalorder %s3250_s29, %s3250_s29 }
 0x89a   :  { %3010 = vmatprep.subr.bf16.mxu0 %v3317_v51  ;;  %v3020_v0 = vpack.c.bf16 %v1897_v33, %v1896_v25  ;;  %v3023_v44 = vpack.c.bf16 %v1899_v42, %v1898_v35  ;;  %v1900_v47 = vld [vmem:[#allocation13 + $0x60] sm:$0xff]  ;;  %v1901_v50 = vld [vmem:[#allocation13 + $0x68] sm:$0xff]  ;;  %v1902_v55 = vld [vmem:[#allocation13 + $0x70] sm:$0xff] }
 0x89b   :  { %v3026_v53 = vpack.c.bf16 %v1901_v50, %v1900_v47  ;;  %v1903_v58 = vld [vmem:[#allocation13 + $0x78] sm:$0xff]  ;;  %p3257_p8 = por %p3256_p7, %p3255_p6 }
 0x89c   :  { %v1885_v63 = vld [vmem:[#allocation4] sm:$0xff]  ;;  %v3029_v1 = vpack.c.bf16 %v1903_v58, %v1902_v55 }
 0x89d   :  { %v1886_v13 = vmul.f32 0.125, %v1885_v63  ;;  %3012 = vmatpush3.bf16.msra.mxu0 %v3011_v56  ;;  %p3258_p9 = pnand %p3257_p8, %p3251_p5 }
 0x89e   :  { %3013 = vmatprep.subr.bf16.mxu0 %v3317_v51 }
 0x89f   :  { %1887 = vst [vmem:[#allocation15] sm:$0xff] %v1886_v13 }
 0x8a1   :  { %3015 = vmatpush3.bf16.msra.mxu0 %v3014_v6 }
 0x8a2   :  { %3016 = vmatprep.subr.bf16.mxu0 %v3317_v51 }
 0x8a5   :  { %3018 = vmatpush3.bf16.msra.mxu0 %v3017_v24 }
 0x8a6   :  { %3019 = vmatprep.subr.bf16.mxu0 %v3317_v51 }
 0x8a9   :  { %3021 = vmatpush3.bf16.msra.mxu0 %v3020_v0 }
 0x8aa   :  { %3022 = vmatprep.subr.bf16.mxu0 %v3317_v51 }
 0x8ad   :  { %3024 = vmatpush3.bf16.msra.mxu0 %v3023_v44 }
 0x8ae   :  { %3025 = vmatprep.subr.bf16.mxu0 %v3317_v51 }
 0x8b1   :  { %3027 = vmatpush3.bf16.msra.mxu0 %v3026_v53 }
 0x8b2   :  { %3028 = vmatprep.subr.bf16.mxu0 %v3317_v51 }
 0x8b5   :  { %3030 = vmatpush3.bf16.msra.mxu0 %v3029_v1 }
 0x8b8   :  { %2549 = vmatmul.mubr.f32.vlgmr.msra.gmra.mrb[0].mxu0 %v1886_v13 }
 0x8b9   :  { %3261 = shalt.err (!%p3258_p9)
}
 0x8ba   :  { %s3262_s12 = scalar_lea.hbm %s3977_s9, 128 }
 0x8bb   :  { %p3263_p10 = scmp.ne.s32.totalorder %s3977_s9, %s3262_s12  ;;  %p3266_p11 = scmp.lt.u32.totalorder %s3262_s12, %s3977_s9 }
 0x8bd   :  { %p3268_p12 = pnand %p3266_p11, %p3263_p10 }
 0x8bf   :  { %3271 = shalt.err (!%p3268_p12)
}
 0x8c0   :  { %1991 = dma.vmem_to_hbm [thread:$0]  %s1989_s25, 128, %s3977_s9, [#allocation9]   ;;  %v2056_v4 = vld [vmem:[%s3976_s8] ss:$0 sm:$0xff] }
 0x8c1   :  { %s3320_s20 = smov [#allocation16]  }
 0x8c2   :  { %s1998_s22 = sshll.u32 %s3320_s20, 4  ;;  %s1999_s22 = int_to_ptr.vmem [resolvable:$true] %s1998_s22 }
 0x8c3   :  { %s3272_s26 = scalar_lea.vmem %s1999_s22, 128  ;;  %p3277_p0 = scmp.lt.s32.totalorder %s1999_s22, %s1999_s22 }
 0x8c4   :  { %p3273_p13 = scmp.ne.s32.totalorder %s1999_s22, %s3272_s26  ;;  %p3278_p1 = scmp.lt.s32.totalorder %s3272_s26, %s3272_s26 }
 0x8c6   :  { %p3279_p2 = por %p3278_p1, %p3277_p0 }
 0x8c8   :  { %p3280_p3 = pnand %p3279_p2, %p3273_p13 }
 0x98b   :  { %v1977_v8 = vpop.f32.mrb[0].mxu0 }
 0x98c   :  { %v1978_v15 = vadd.f32 %v2056_v4, %v1977_v8  ;;  %v2550_v20 = vpop.f32.mrb[1].mxu0 }
 0x98e   :  { %1981 = vst [vmem:[#allocation16] sm:$0xff] %v1978_v15 }
 0x98f   :  { %3283 = shalt.err (!%p3280_p3)
}
 0x990   :  { %s3284_s4 = scalar_lea.hbm %s3978_s10, 128 }
 0x991   :  { %p3285_p4 = scmp.ne.s32.totalorder %s3978_s10, %s3284_s4  ;;  %p3288_p5 = scmp.lt.u32.totalorder %s3284_s4, %s3978_s10 }
 0x993   :  { %p3290_p6 = pnand %p3288_p5, %p3285_p4 }
 0x995   :  { %3293 = shalt.err (!%p3290_p6)
}
 0x996   :  { %2001 = dma.vmem_to_hbm [thread:$0]  %s1999_s22, 128, %s3978_s10, [#allocation17]  }
 0x997   :  { %3300 = dma.done.wait [#allocation9], 128  }
 0x998   :  { %3301 = vsyncadd [#allocation9], 4294967168 }
 0x999   :  { %3302 = dma.done.wait [#allocation17], 128  }
 0x99a   :  { %3303 = vsyncadd [#allocation17], 4294967168 }
 0x99b   :  { %2008 = vsyncpa [#allocation8], 1 }
 0x99c   :  { %2009 = vsyncpa [#allocation11], 1 }
 0x99d   :  { %2010 = vsyncpa [#allocation14], 1 }
 0x99e   :  { %2011 = vsyncpa [#allocation9], 1 }
 0x99f   :  { %2012 = vsyncpa [#allocation17], 1 }

</bundles_post_ra>
